<compile_context>
chip_gen: v6e
topology: v6e:2x2x1
jax: 0.10.0
libtpu: 0.0.40
codegen_flags: <defaults>
</compile_context>

<pallas_src>
import functools

import jax
import jax.numpy as jnp
from jax import lax
from jax.experimental import pallas as pl
from jax.experimental.pallas import tpu as pltpu

KERNEL_SIZE = 7
PAD = 3  # "same" padding for kernel_size = 7 (matches the PyTorch module)


def _spatial_attention_kernel(wm_ref, x_ref, o_ref, sum_ref, max_ref, *,
                              img_w, n_chan, c_padded):
    """Grid = (N, C_chunks).

    wm_ref : (49, 2, HW) per-tap (border-mask * conv-weight) planes;
             row 0 = avg channel (1/C folded in), row 1 = max channel.
    x_ref  : (1, c_tile, HW) channel chunk in the input dtype.
    o_ref  : (1, 1, HW) sigmoid(conv) output for this image.
    sum_ref / max_ref : (8, HW) f32 sublane-partial channel sum / max.
    """
    c_idx = pl.program_id(1)
    c_tile = x_ref.shape[1]
    hw = sum_ref.shape[1]

    @pl.when(c_idx == 0)
    def _init():
        sum_ref[...] = jnp.zeros(sum_ref.shape, jnp.float32)
        max_ref[...] = jnp.full(max_ref.shape, -jnp.inf, jnp.float32)

    # Streaming channel reduction kept as dense 8-sublane partials (pure VPU
    # adds/maxes + full-tile stores; no per-chunk cross-sublane reduce).
    chunk = x_ref[0].astype(jnp.float32)                       # (c_tile, HW)
    if c_padded:
        # Channels >= n_chan are zero padding: fine for the sum, mask for max.
        ch = c_idx * c_tile + lax.broadcasted_iota(jnp.int32, chunk.shape, 0)
        chunk_for_max = jnp.where(ch < n_chan, chunk, -jnp.inf)
    else:
        chunk_for_max = chunk
    groups = c_tile // 8
    sum_ref[...] = sum_ref[...] + jnp.sum(chunk.reshape(groups, 8, hw), axis=0)
    max_ref[...] = jnp.maximum(
        max_ref[...], jnp.max(chunk_for_max.reshape(groups, 8, hw), axis=0))

    @pl.when(c_idx == pl.num_programs(1) - 1)
    def _finish():
        # Single 8->1 sublane collapse per image, then the 7x7 "same" conv as
        # 49 static lane rotations + FMAs on the whole (2, HW) plane at once.
        plane_sum = jnp.sum(sum_ref[...], axis=0, keepdims=True)   # (1, HW)
        plane_max = jnp.max(max_ref[...], axis=0, keepdims=True)   # (1, HW)
        planes = jnp.concatenate([plane_sum, plane_max], axis=0)   # (2, HW)
        acc = jnp.zeros((2, hw), jnp.float32)
        for kh in range(KERNEL_SIZE):
            for kw in range(KERNEL_SIZE):
                # Tap (kh, kw) at flat output pixel p reads source pixel p + d;
                # a lane rotation by (-d mod HW) aligns it.  Border-invalid /
                # row-wrapped taps were zeroed into wm on the host side.
                d = (kh - PAD) * img_w + (kw - PAD)
                shift = (-d) % hw
                shifted = planes if shift == 0 else jnp.roll(planes, shift, axis=1)
                t = kh * KERNEL_SIZE + kw
                acc = acc + wm_ref[t].astype(jnp.float32) * shifted
        o_ref[0, 0, :] = jax.nn.sigmoid(acc[0, :] + acc[1, :]).astype(o_ref.dtype)


def _vmem_budgets():
    """(vmem_limit_bytes, per-block channel-chunk budget) for this chip."""
    try:
        cap = int(pltpu.get_tpu_info().vmem_capacity_bytes)
    except Exception:
        cap = 64 * 1024 * 1024                       # conservative (v7x-sized)
    if cap >= 128 * 1024 * 1024:                     # v5e / v6e: 128 MiB VMEM
        return 96 * 1024 * 1024, 12 * 1024 * 1024
    return 48 * 1024 * 1024, 5 * 1024 * 1024         # v7x: 64 MiB VMEM


def _pick_c_tile(C, hw, itemsize, budget_bytes):
    """Channel-chunk size: a multiple of the dtype's sublane packing that keeps
    one (1, c_tile, HW) block under budget.  Returns (c_tile, C_pad) where
    C_pad is a multiple of c_tile (the wrapper zero-pads the channel axis)."""
    sub = max(8, 32 // itemsize)                     # 8 f32, 16 bf16, 32 int8
    row_bytes = hw * itemsize
    max_ch = max(sub, (budget_bytes // row_bytes) // sub * sub)
    c_full = ((C + sub - 1) // sub) * sub
    c_tile = c_full if c_full <= max_ch else max_ch
    c_pad = ((C + c_tile - 1) // c_tile) * c_tile
    return c_tile, c_pad


def _x_block_spec(c_tile, hw, want_extra_buffer):
    idx = lambda n, c: (n, c, 0)
    if want_extra_buffer and hasattr(pl, "Buffered"):
        try:
            # 3rd buffer lets the next chunks keep streaming through the long
            # last-chunk (conv + sigmoid) epilogue.
            return pl.BlockSpec((1, c_tile, hw), idx, pipeline_mode=pl.Buffered(3))
        except TypeError:
            pass
    return pl.BlockSpec((1, c_tile, hw), idx)


def spatial_attention(x, weight, *, c_block_budget_bytes=None):
    """x: (N, C, H, W); weight: (1, 2, 7, 7) OIHW, no bias.  Returns (N, 1, H, W)."""
    N, C, H, W = x.shape
    HW = H * W
    vmem_limit, default_budget = _vmem_budgets()
    budget = c_block_budget_bytes if c_block_budget_bytes else default_budget
    c_tile, C_pad = _pick_c_tile(C, HW, x.dtype.itemsize, budget)
    num_c = C_pad // c_tile

    # Per-tap (mask * weight) planes, built once outside the kernel.  The conv
    # is linear, so the 1/C of the channel mean is folded into the avg-channel
    # taps, and the 0/1 "same"-padding border mask (which also kills the flat
    # lane-rotation row wraparound) is folded in too.
    ii = (jnp.arange(HW, dtype=jnp.int32) // W)[None, :]
    jj = (jnp.arange(HW, dtype=jnp.int32) % W)[None, :]
    dk = (jnp.arange(KERNEL_SIZE, dtype=jnp.int32) - PAD)[:, None]
    rmask = (ii + dk >= 0) & (ii + dk < H)                            # (7, HW)
    cmask = (jj + dk >= 0) & (jj + dk < W)                            # (7, HW)
    mask = (rmask[:, None, :] & cmask[None, :, :]).reshape(
        KERNEL_SIZE * KERNEL_SIZE, HW).astype(jnp.float32)            # (49, HW)
    chan_scale = jnp.array([1.0 / C, 1.0], jnp.float32).reshape(1, 2, 1, 1)
    w_taps = (weight.astype(jnp.float32) * chan_scale).reshape(
        2, KERNEL_SIZE * KERNEL_SIZE)                                 # (2, 49)
    wm = w_taps.T[:, :, None] * mask[:, None, :]                      # (49, 2, HW)
    if wm.size * 4 > 8 * 1024 * 1024:
        # Very large feature maps: keep the tap planes bf16 so they stay small
        # relative to v7x's 64 MiB VMEM.
        wm = wm.astype(jnp.bfloat16)

    x_flat = x.reshape(N, C, HW)              # free reshape; lane-dense blocks
    if C_pad != C:
        x_flat = jnp.pad(x_flat, ((0, 0), (0, C_pad - C), (0, 0)))

    cost = pl.CostEstimate(
        flops=int(N * HW * (2 * C + 4 * KERNEL_SIZE * KERNEL_SIZE)),
        transcendentals=int(N * HW),
        bytes_accessed=int((N * C_pad * HW + N * HW) * x.dtype.itemsize
                           + wm.size * wm.dtype.itemsize),
    )

    kernel = functools.partial(_spatial_attention_kernel,
                               img_w=W, n_chan=C, c_padded=(C_pad != C))

    out = pl.pallas_call(
        kernel,
        out_shape=jax.ShapeDtypeStruct((N, 1, HW), x.dtype),
        grid=(N, num_c),
        in_specs=[
            pl.BlockSpec((KERNEL_SIZE * KERNEL_SIZE, 2, HW),
                         lambda n, c: (0, 0, 0)),                 # tap planes
            _x_block_spec(c_tile, HW, want_extra_buffer=(num_c >= 2)),
        ],
        out_specs=pl.BlockSpec((1, 1, HW), lambda n, c: (n, 0, 0)),
        scratch_shapes=[pltpu.VMEM((8, HW), jnp.float32),   # channel-sum partials
                        pltpu.VMEM((8, HW), jnp.float32)],  # channel-max partials
        compiler_params=pltpu.CompilerParams(
            dimension_semantics=("parallel", "arbitrary"),
            vmem_limit_bytes=vmem_limit,
        ),
        cost_estimate=cost,
    )(wm, x_flat)

    return out.reshape(N, 1, H, W)


def spatial_attention_ref(x, weight):
    """Pure-JAX reference replicating the PyTorch forward."""
    avg_out = jnp.mean(x, axis=1, keepdims=True)
    max_out = jnp.max(x, axis=1, keepdims=True)
    cat = jnp.concatenate([avg_out, max_out], axis=1)                 # (N,2,H,W)
    y = lax.conv_general_dilated(
        cat.astype(jnp.float32), weight.astype(jnp.float32),
        window_strides=(1, 1), padding=[(PAD, PAD), (PAD, PAD)],
        dimension_numbers=("NCHW", "OIHW", "NCHW"))
    return jax.nn.sigmoid(y).astype(x.dtype)


if __name__ == "__main__":
    key = jax.random.PRNGKey(0)
    kx, kw, kx2 = jax.random.split(key, 3)

    # Deterministic conv weight (kaiming-ish scale), shape (out=1, in=2, 7, 7).
    fan_in = 2 * KERNEL_SIZE * KERNEL_SIZE
    weight = jax.random.normal(kw, (1, 2, KERNEL_SIZE, KERNEL_SIZE),
                               dtype=jnp.float32) * (1.0 / jnp.sqrt(fan_in))

    # Primary case.
    N, C, H, W = 2, 4, 16, 16
    x = jax.random.normal(kx, (N, C, H, W), dtype=jnp.float32)
    out = jax.block_until_ready(jax.jit(spatial_attention)(x, weight))
    ref = spatial_attention_ref(x, weight)
    assert out.shape == (N, 1, H, W), out.shape
    assert jnp.allclose(out, ref, rtol=1e-5, atol=1e-5), \
        f"max abs err {jnp.max(jnp.abs(out - ref))}"

    # Multi-chunk case: a small per-block budget forces several channel chunks
    # (plus channel padding), exercising the streamed accumulation path.
    C2 = 20
    x2 = jax.random.normal(kx2, (N, C2, H, W), dtype=jnp.float32)
    fn2 = jax.jit(functools.partial(spatial_attention,
                                    c_block_budget_bytes=8 * 1024))
    out2 = jax.block_until_ready(fn2(x2, weight))
    ref2 = spatial_attention_ref(x2, weight)
    assert jnp.allclose(out2, ref2, rtol=1e-5, atol=1e-5), \
        f"max abs err {jnp.max(jnp.abs(out2 - ref2))}"

    print("KERNEL_OK")
</pallas_src>

<mosaic_0001>
module attributes {stable_mosaic.version = 11 : i64} {
  func.func @_spatial_attention_kernel(%arg0: i32, %arg1: i32, %arg2: memref<49x2x256xf32, #tpu.memory_space<vmem>>, %arg3: memref<1x8x256xf32, #tpu.memory_space<vmem>>, %arg4: memref<1x1x256xf32, #tpu.memory_space<vmem>>, %arg5: memref<8x256xf32, #tpu.memory_space<vmem>>, %arg6: memref<8x256xf32, #tpu.memory_space<vmem>>) attributes {dimension_semantics = [#tpu.dimension_semantics<parallel>, #tpu.dimension_semantics<arbitrary>], iteration_bounds = array<i64: 2, 1>, scalar_prefetch = 0 : i64, scratch_operands = 2 : i64, tpu.core_type = #tpu.core_type<tc>, window_params = [{pipeline_mode = #tpu.pipeline_mode<synchronous>, transform_indices = @transform_0, window_bounds = array<i64: 49, 2, 256>}, {transform_indices = @transform_1, window_bounds = array<i64: 1, 8, 256>}, {transform_indices = @transform_2, window_bounds = array<i64: 1, 1, 256>}]} {
    %c0_i32 = arith.constant 0 : i32
    %0 = arith.cmpi eq, %arg1, %c0_i32 : i32
    %1 = arith.extui %0 : i1 to i32
    %c0_i32_0 = arith.constant 0 : i32
    %2 = arith.cmpi ne, %1, %c0_i32_0 : i32
    scf.if %2 {
      %cst_15 = arith.constant 0.000000e+00 : f32
      %26 = vector.broadcast %cst_15 : f32 to vector<8x256xf32>
      %c0_16 = arith.constant 0 : index
      %c0_17 = arith.constant 0 : index
      %27 = vector.load %arg5[%c0_16, %c0_17] : memref<8x256xf32, #tpu.memory_space<vmem>>, vector<8x256xf32>
      tpu.vector_store %arg5[%c0_16, %c0_17], %26 {strides = array<i32>} : memref<8x256xf32, #tpu.memory_space<vmem>>, vector<8x256xf32>,
      %cst_18 = arith.constant 0xFF800000 : f32
      %28 = vector.broadcast %cst_18 : f32 to vector<8x256xf32>
      %c0_19 = arith.constant 0 : index
      %c0_20 = arith.constant 0 : index
      %29 = vector.load %arg6[%c0_19, %c0_20] : memref<8x256xf32, #tpu.memory_space<vmem>>, vector<8x256xf32>
      tpu.vector_store %arg6[%c0_19, %c0_20], %28 {strides = array<i32>} : memref<8x256xf32, #tpu.memory_space<vmem>>, vector<8x256xf32>,
    } else {
    }
    %c0 = arith.constant 0 : index
    %c0_1 = arith.constant 0 : index
    %c0_2 = arith.constant 0 : index
    %3 = vector.load %arg3[%c0, %c0_1, %c0_2] : memref<1x8x256xf32, #tpu.memory_space<vmem>>, vector<1x8x256xf32>
    %4 = vector.shape_cast %3 : vector<1x8x256xf32> to vector<8x256xf32>
    %c8_i32 = arith.constant 8 : i32
    %5 = arith.muli %arg1, %c8_i32 : i32
    %6 = tpu.iota {dimensions = array<i32: 0>} : vector<8x256xi32>
    %7 = vector.broadcast %5 : i32 to vector<8x256xi32>
    %8 = arith.addi %7, %6 : vector<8x256xi32>
    %c4_i32 = arith.constant 4 : i32
    %9 = vector.broadcast %c4_i32 : i32 to vector<8x256xi32>
    %10 = arith.cmpi slt, %8, %9 : vector<8x256xi32>
    %cst = arith.constant 0xFF800000 : f32
    %11 = vector.broadcast %cst : f32 to vector<8x256xf32>
    %12 = arith.select %10, %4, %11 : vector<8x256xi1>, vector<8x256xf32>
    %c0_3 = arith.constant 0 : index
    %c0_4 = arith.constant 0 : index
    %13 = vector.load %arg5[%c0_3, %c0_4] : memref<8x256xf32, #tpu.memory_space<vmem>>, vector<8x256xf32>
    %14 = vector.shape_cast %4 : vector<8x256xf32> to vector<1x8x256xf32>
    %cst_5 = arith.constant dense<0.000000e+00> : vector<8x256xf32>
    %15 = vector.multi_reduction <add>, %14, %cst_5 [0] : vector<1x8x256xf32> to vector<8x256xf32>
    %16 = arith.addf %13, %15 : vector<8x256xf32>
    %c0_6 = arith.constant 0 : index
    %c0_7 = arith.constant 0 : index
    %17 = vector.load %arg5[%c0_6, %c0_7] : memref<8x256xf32, #tpu.memory_space<vmem>>, vector<8x256xf32>
    tpu.vector_store %arg5[%c0_6, %c0_7], %16 {strides = array<i32>} : memref<8x256xf32, #tpu.memory_space<vmem>>, vector<8x256xf32>,
    %c0_8 = arith.constant 0 : index
    %c0_9 = arith.constant 0 : index
    %18 = vector.load %arg6[%c0_8, %c0_9] : memref<8x256xf32, #tpu.memory_space<vmem>>, vector<8x256xf32>
    %19 = vector.shape_cast %12 : vector<8x256xf32> to vector<1x8x256xf32>
    %cst_10 = arith.constant dense<0xFF800000> : vector<8x256xf32>
    %20 = vector.multi_reduction <maximumf>, %19, %cst_10 [0] : vector<1x8x256xf32> to vector<8x256xf32>
    %21 = arith.maximumf %18, %20 : vector<8x256xf32>
    %c0_11 = arith.constant 0 : index
    %c0_12 = arith.constant 0 : index
    %22 = vector.load %arg6[%c0_11, %c0_12] : memref<8x256xf32, #tpu.memory_space<vmem>>, vector<8x256xf32>
    tpu.vector_store %arg6[%c0_11, %c0_12], %21 {strides = array<i32>} : memref<8x256xf32, #tpu.memory_space<vmem>>, vector<8x256xf32>,
    %c0_i32_13 = arith.constant 0 : i32
    %23 = arith.cmpi eq, %arg1, %c0_i32_13 : i32
    %24 = arith.extui %23 : i1 to i32
    %c0_i32_14 = arith.constant 0 : i32
    %25 = arith.cmpi ne, %24, %c0_i32_14 : i32
    scf.if %25 {
      %c0_15 = arith.constant 0 : index
      %c0_16 = arith.constant 0 : index
      %26 = vector.load %arg5[%c0_15, %c0_16] : memref<8x256xf32, #tpu.memory_space<vmem>>, vector<8x256xf32>
      %cst_17 = arith.constant dense<0.000000e+00> : vector<256xf32>
      %27 = vector.multi_reduction <add>, %26, %cst_17 [0] : vector<8x256xf32> to vector<256xf32>
      %28 = vector.shape_cast %27 : vector<256xf32> to vector<1x256xf32>
      %c0_18 = arith.constant 0 : index
      %c0_19 = arith.constant 0 : index
      %29 = vector.load %arg6[%c0_18, %c0_19] : memref<8x256xf32, #tpu.memory_space<vmem>>, vector<8x256xf32>
      %cst_20 = arith.constant dense<0xFF800000> : vector<256xf32>
      %30 = vector.multi_reduction <maximumf>, %29, %cst_20 [0] : vector<8x256xf32> to vector<256xf32>
      %31 = vector.shape_cast %30 : vector<256xf32> to vector<1x256xf32>
      %32 = tpu.concatenate %28, %31 in 0 : vector<1x256xf32>, vector<1x256xf32> -> vector<2x256xf32>
      %cst_21 = arith.constant 0.000000e+00 : f32
      %33 = vector.broadcast %cst_21 : f32 to vector<2x256xf32>
      %34 = vector.extract_strided_slice %32 {offsets = [0, 205], sizes = [2, 51], strides = [1, 1]} : vector<2x256xf32> to vector<2x51xf32>
      %35 = vector.extract_strided_slice %32 {offsets = [0, 0], sizes = [2, 205], strides = [1, 1]} : vector<2x256xf32> to vector<2x205xf32>
      %36 = tpu.concatenate %34, %35 in 1 : vector<2x51xf32>, vector<2x205xf32> -> vector<2x256xf32>
      %c0_22 = arith.constant 0 : index
      %c0_23 = arith.constant 0 : index
      %c0_24 = arith.constant 0 : index
      %37 = vector.load %arg2[%c0_22, %c0_23, %c0_24] : memref<49x2x256xf32, #tpu.memory_space<vmem>>, vector<1x2x256xf32>
      %38 = vector.shape_cast %37 : vector<1x2x256xf32> to vector<2x256xf32>
      %39 = arith.mulf %38, %36 : vector<2x256xf32>
      %40 = arith.addf %33, %39 : vector<2x256xf32>
      %41 = vector.extract_strided_slice %32 {offsets = [0, 206], sizes = [2, 50], strides = [1, 1]} : vector<2x256xf32> to vector<2x50xf32>
      %42 = vector.extract_strided_slice %32 {offsets = [0, 0], sizes = [2, 206], strides = [1, 1]} : vector<2x256xf32> to vector<2x206xf32>
      %43 = tpu.concatenate %41, %42 in 1 : vector<2x50xf32>, vector<2x206xf32> -> vector<2x256xf32>
      %c1 = arith.constant 1 : index
      %c0_25 = arith.constant 0 : index
      %c0_26 = arith.constant 0 : index
      %44 = vector.load %arg2[%c1, %c0_25, %c0_26] : memref<49x2x256xf32, #tpu.memory_space<vmem>>, vector<1x2x256xf32>
      %45 = vector.shape_cast %44 : vector<1x2x256xf32> to vector<2x256xf32>
      %46 = arith.mulf %45, %43 : vector<2x256xf32>
      %47 = arith.addf %40, %46 : vector<2x256xf32>
      %48 = vector.extract_strided_slice %32 {offsets = [0, 207], sizes = [2, 49], strides = [1, 1]} : vector<2x256xf32> to vector<2x49xf32>
      %49 = vector.extract_strided_slice %32 {offsets = [0, 0], sizes = [2, 207], strides = [1, 1]} : vector<2x256xf32> to vector<2x207xf32>
      %50 = tpu.concatenate %48, %49 in 1 : vector<2x49xf32>, vector<2x207xf32> -> vector<2x256xf32>
      %c2 = arith.constant 2 : index
      %c0_27 = arith.constant 0 : index
      %c0_28 = arith.constant 0 : index
      %51 = vector.load %arg2[%c2, %c0_27, %c0_28] : memref<49x2x256xf32, #tpu.memory_space<vmem>>, vector<1x2x256xf32>
      %52 = vector.shape_cast %51 : vector<1x2x256xf32> to vector<2x256xf32>
      %53 = arith.mulf %52, %50 : vector<2x256xf32>
      %54 = arith.addf %47, %53 : vector<2x256xf32>
      %55 = vector.extract_strided_slice %32 {offsets = [0, 208], sizes = [2, 48], strides = [1, 1]} : vector<2x256xf32> to vector<2x48xf32>
      %56 = vector.extract_strided_slice %32 {offsets = [0, 0], sizes = [2, 208], strides = [1, 1]} : vector<2x256xf32> to vector<2x208xf32>
      %57 = tpu.concatenate %55, %56 in 1 : vector<2x48xf32>, vector<2x208xf32> -> vector<2x256xf32>
      %c3 = arith.constant 3 : index
      %c0_29 = arith.constant 0 : index
      %c0_30 = arith.constant 0 : index
      %58 = vector.load %arg2[%c3, %c0_29, %c0_30] : memref<49x2x256xf32, #tpu.memory_space<vmem>>, vector<1x2x256xf32>
      %59 = vector.shape_cast %58 : vector<1x2x256xf32> to vector<2x256xf32>
      %60 = arith.mulf %59, %57 : vector<2x256xf32>
      %61 = arith.addf %54, %60 : vector<2x256xf32>
      %62 = vector.extract_strided_slice %32 {offsets = [0, 209], sizes = [2, 47], strides = [1, 1]} : vector<2x256xf32> to vector<2x47xf32>
      %63 = vector.extract_strided_slice %32 {offsets = [0, 0], sizes = [2, 209], strides = [1, 1]} : vector<2x256xf32> to vector<2x209xf32>
      %64 = tpu.concatenate %62, %63 in 1 : vector<2x47xf32>, vector<2x209xf32> -> vector<2x256xf32>
      %c4 = arith.constant 4 : index
      %c0_31 = arith.constant 0 : index
      %c0_32 = arith.constant 0 : index
      %65 = vector.load %arg2[%c4, %c0_31, %c0_32] : memref<49x2x256xf32, #tpu.memory_space<vmem>>, vector<1x2x256xf32>
      %66 = vector.shape_cast %65 : vector<1x2x256xf32> to vector<2x256xf32>
      %67 = arith.mulf %66, %64 : vector<2x256xf32>
      %68 = arith.addf %61, %67 : vector<2x256xf32>
      %69 = vector.extract_strided_slice %32 {offsets = [0, 210], sizes = [2, 46], strides = [1, 1]} : vector<2x256xf32> to vector<2x46xf32>
      %70 = vector.extract_strided_slice %32 {offsets = [0, 0], sizes = [2, 210], strides = [1, 1]} : vector<2x256xf32> to vector<2x210xf32>
      %71 = tpu.concatenate %69, %70 in 1 : vector<2x46xf32>, vector<2x210xf32> -> vector<2x256xf32>
      %c5 = arith.constant 5 : index
      %c0_33 = arith.constant 0 : index
      %c0_34 = arith.constant 0 : index
      %72 = vector.load %arg2[%c5, %c0_33, %c0_34] : memref<49x2x256xf32, #tpu.memory_space<vmem>>, vector<1x2x256xf32>
      %73 = vector.shape_cast %72 : vector<1x2x256xf32> to vector<2x256xf32>
      %74 = arith.mulf %73, %71 : vector<2x256xf32>
      %75 = arith.addf %68, %74 : vector<2x256xf32>
      %76 = vector.extract_strided_slice %32 {offsets = [0, 211], sizes = [2, 45], strides = [1, 1]} : vector<2x256xf32> to vector<2x45xf32>
      %77 = vector.extract_strided_slice %32 {offsets = [0, 0], sizes = [2, 211], strides = [1, 1]} : vector<2x256xf32> to vector<2x211xf32>
      %78 = tpu.concatenate %76, %77 in 1 : vector<2x45xf32>, vector<2x211xf32> -> vector<2x256xf32>
      %c6 = arith.constant 6 : index
      %c0_35 = arith.constant 0 : index
      %c0_36 = arith.constant 0 : index
      %79 = vector.load %arg2[%c6, %c0_35, %c0_36] : memref<49x2x256xf32, #tpu.memory_space<vmem>>, vector<1x2x256xf32>
      %80 = vector.shape_cast %79 : vector<1x2x256xf32> to vector<2x256xf32>
      %81 = arith.mulf %80, %78 : vector<2x256xf32>
      %82 = arith.addf %75, %81 : vector<2x256xf32>
      %83 = vector.extract_strided_slice %32 {offsets = [0, 221], sizes = [2, 35], strides = [1, 1]} : vector<2x256xf32> to vector<2x35xf32>
      %84 = vector.extract_strided_slice %32 {offsets = [0, 0], sizes = [2, 221], strides = [1, 1]} : vector<2x256xf32> to vector<2x221xf32>
      %85 = tpu.concatenate %83, %84 in 1 : vector<2x35xf32>, vector<2x221xf32> -> vector<2x256xf32>
      %c7 = arith.constant 7 : index
      %c0_37 = arith.constant 0 : index
      %c0_38 = arith.constant 0 : index
      %86 = vector.load %arg2[%c7, %c0_37, %c0_38] : memref<49x2x256xf32, #tpu.memory_space<vmem>>, vector<1x2x256xf32>
      %87 = vector.shape_cast %86 : vector<1x2x256xf32> to vector<2x256xf32>
      %88 = arith.mulf %87, %85 : vector<2x256xf32>
      %89 = arith.addf %82, %88 : vector<2x256xf32>
      %90 = vector.extract_strided_slice %32 {offsets = [0, 222], sizes = [2, 34], strides = [1, 1]} : vector<2x256xf32> to vector<2x34xf32>
      %91 = vector.extract_strided_slice %32 {offsets = [0, 0], sizes = [2, 222], strides = [1, 1]} : vector<2x256xf32> to vector<2x222xf32>
      %92 = tpu.concatenate %90, %91 in 1 : vector<2x34xf32>, vector<2x222xf32> -> vector<2x256xf32>
      %c8 = arith.constant 8 : index
      %c0_39 = arith.constant 0 : index
      %c0_40 = arith.constant 0 : index
      %93 = vector.load %arg2[%c8, %c0_39, %c0_40] : memref<49x2x256xf32, #tpu.memory_space<vmem>>, vector<1x2x256xf32>
      %94 = vector.shape_cast %93 : vector<1x2x256xf32> to vector<2x256xf32>
      %95 = arith.mulf %94, %92 : vector<2x256xf32>
      %96 = arith.addf %89, %95 : vector<2x256xf32>
      %97 = vector.extract_strided_slice %32 {offsets = [0, 223], sizes = [2, 33], strides = [1, 1]} : vector<2x256xf32> to vector<2x33xf32>
      %98 = vector.extract_strided_slice %32 {offsets = [0, 0], sizes = [2, 223], strides = [1, 1]} : vector<2x256xf32> to vector<2x223xf32>
      %99 = tpu.concatenate %97, %98 in 1 : vector<2x33xf32>, vector<2x223xf32> -> vector<2x256xf32>
      %c9 = arith.constant 9 : index
      %c0_41 = arith.constant 0 : index
      %c0_42 = arith.constant 0 : index
      %100 = vector.load %arg2[%c9, %c0_41, %c0_42] : memref<49x2x256xf32, #tpu.memory_space<vmem>>, vector<1x2x256xf32>
      %101 = vector.shape_cast %100 : vector<1x2x256xf32> to vector<2x256xf32>
      %102 = arith.mulf %101, %99 : vector<2x256xf32>
      %103 = arith.addf %96, %102 : vector<2x256xf32>
      %104 = vector.extract_strided_slice %32 {offsets = [0, 224], sizes = [2, 32], strides = [1, 1]} : vector<2x256xf32> to vector<2x32xf32>
      %105 = vector.extract_strided_slice %32 {offsets = [0, 0], sizes = [2, 224], strides = [1, 1]} : vector<2x256xf32> to vector<2x224xf32>
      %106 = tpu.concatenate %104, %105 in 1 : vector<2x32xf32>, vector<2x224xf32> -> vector<2x256xf32>
      %c10 = arith.constant 10 : index
      %c0_43 = arith.constant 0 : index
      %c0_44 = arith.constant 0 : index
      %107 = vector.load %arg2[%c10, %c0_43, %c0_44] : memref<49x2x256xf32, #tpu.memory_space<vmem>>, vector<1x2x256xf32>
      %108 = vector.shape_cast %107 : vector<1x2x256xf32> to vector<2x256xf32>
      %109 = arith.mulf %108, %106 : vector<2x256xf32>
      %110 = arith.addf %103, %109 : vector<2x256xf32>
      %111 = vector.extract_strided_slice %32 {offsets = [0, 225], sizes = [2, 31], strides = [1, 1]} : vector<2x256xf32> to vector<2x31xf32>
      %112 = vector.extract_strided_slice %32 {offsets = [0, 0], sizes = [2, 225], strides = [1, 1]} : vector<2x256xf32> to vector<2x225xf32>
      %113 = tpu.concatenate %111, %112 in 1 : vector<2x31xf32>, vector<2x225xf32> -> vector<2x256xf32>
      %c11 = arith.constant 11 : index
      %c0_45 = arith.constant 0 : index
      %c0_46 = arith.constant 0 : index
      %114 = vector.load %arg2[%c11, %c0_45, %c0_46] : memref<49x2x256xf32, #tpu.memory_space<vmem>>, vector<1x2x256xf32>
      %115 = vector.shape_cast %114 : vector<1x2x256xf32> to vector<2x256xf32>
      %116 = arith.mulf %115, %113 : vector<2x256xf32>
      %117 = arith.addf %110, %116 : vector<2x256xf32>
      %118 = vector.extract_strided_slice %32 {offsets = [0, 226], sizes = [2, 30], strides = [1, 1]} : vector<2x256xf32> to vector<2x30xf32>
      %119 = vector.extract_strided_slice %32 {offsets = [0, 0], sizes = [2, 226], strides = [1, 1]} : vector<2x256xf32> to vector<2x226xf32>
      %120 = tpu.concatenate %118, %119 in 1 : vector<2x30xf32>, vector<2x226xf32> -> vector<2x256xf32>
      %c12 = arith.constant 12 : index
      %c0_47 = arith.constant 0 : index
      %c0_48 = arith.constant 0 : index
      %121 = vector.load %arg2[%c12, %c0_47, %c0_48] : memref<49x2x256xf32, #tpu.memory_space<vmem>>, vector<1x2x256xf32>
      %122 = vector.shape_cast %121 : vector<1x2x256xf32> to vector<2x256xf32>
      %123 = arith.mulf %122, %120 : vector<2x256xf32>
      %124 = arith.addf %117, %123 : vector<2x256xf32>
      %125 = vector.extract_strided_slice %32 {offsets = [0, 227], sizes = [2, 29], strides = [1, 1]} : vector<2x256xf32> to vector<2x29xf32>
      %126 = vector.extract_strided_slice %32 {offsets = [0, 0], sizes = [2, 227], strides = [1, 1]} : vector<2x256xf32> to vector<2x227xf32>
      %127 = tpu.concatenate %125, %126 in 1 : vector<2x29xf32>, vector<2x227xf32> -> vector<2x256xf32>
      %c13 = arith.constant 13 : index
      %c0_49 = arith.constant 0 : index
      %c0_50 = arith.constant 0 : index
      %128 = vector.load %arg2[%c13, %c0_49, %c0_50] : memref<49x2x256xf32, #tpu.memory_space<vmem>>, vector<1x2x256xf32>
      %129 = vector.shape_cast %128 : vector<1x2x256xf32> to vector<2x256xf32>
      %130 = arith.mulf %129, %127 : vector<2x256xf32>
      %131 = arith.addf %124, %130 : vector<2x256xf32>
      %132 = vector.extract_strided_slice %32 {offsets = [0, 237], sizes = [2, 19], strides = [1, 1]} : vector<2x256xf32> to vector<2x19xf32>
      %133 = vector.extract_strided_slice %32 {offsets = [0, 0], sizes = [2, 237], strides = [1, 1]} : vector<2x256xf32> to vector<2x237xf32>
      %134 = tpu.concatenate %132, %133 in 1 : vector<2x19xf32>, vector<2x237xf32> -> vector<2x256xf32>
      %c14 = arith.constant 14 : index
      %c0_51 = arith.constant 0 : index
      %c0_52 = arith.constant 0 : index
      %135 = vector.load %arg2[%c14, %c0_51, %c0_52] : memref<49x2x256xf32, #tpu.memory_space<vmem>>, vector<1x2x256xf32>
      %136 = vector.shape_cast %135 : vector<1x2x256xf32> to vector<2x256xf32>
      %137 = arith.mulf %136, %134 : vector<2x256xf32>
      %138 = arith.addf %131, %137 : vector<2x256xf32>
      %139 = vector.extract_strided_slice %32 {offsets = [0, 238], sizes = [2, 18], strides = [1, 1]} : vector<2x256xf32> to vector<2x18xf32>
      %140 = vector.extract_strided_slice %32 {offsets = [0, 0], sizes = [2, 238], strides = [1, 1]} : vector<2x256xf32> to vector<2x238xf32>
      %141 = tpu.concatenate %139, %140 in 1 : vector<2x18xf32>, vector<2x238xf32> -> vector<2x256xf32>
      %c15 = arith.constant 15 : index
      %c0_53 = arith.constant 0 : index
      %c0_54 = arith.constant 0 : index
      %142 = vector.load %arg2[%c15, %c0_53, %c0_54] : memref<49x2x256xf32, #tpu.memory_space<vmem>>, vector<1x2x256xf32>
      %143 = vector.shape_cast %142 : vector<1x2x256xf32> to vector<2x256xf32>
      %144 = arith.mulf %143, %141 : vector<2x256xf32>
      %145 = arith.addf %138, %144 : vector<2x256xf32>
      %146 = vector.extract_strided_slice %32 {offsets = [0, 239], sizes = [2, 17], strides = [1, 1]} : vector<2x256xf32> to vector<2x17xf32>
      %147 = vector.extract_strided_slice %32 {offsets = [0, 0], sizes = [2, 239], strides = [1, 1]} : vector<2x256xf32> to vector<2x239xf32>
      %148 = tpu.concatenate %146, %147 in 1 : vector<2x17xf32>, vector<2x239xf32> -> vector<2x256xf32>
      %c16 = arith.constant 16 : index
      %c0_55 = arith.constant 0 : index
      %c0_56 = arith.constant 0 : index
      %149 = vector.load %arg2[%c16, %c0_55, %c0_56] : memref<49x2x256xf32, #tpu.memory_space<vmem>>, vector<1x2x256xf32>
      %150 = vector.shape_cast %149 : vector<1x2x256xf32> to vector<2x256xf32>
      %151 = arith.mulf %150, %148 : vector<2x256xf32>
      %152 = arith.addf %145, %151 : vector<2x256xf32>
      %153 = vector.extract_strided_slice %32 {offsets = [0, 240], sizes = [2, 16], strides = [1, 1]} : vector<2x256xf32> to vector<2x16xf32>
      %154 = vector.extract_strided_slice %32 {offsets = [0, 0], sizes = [2, 240], strides = [1, 1]} : vector<2x256xf32> to vector<2x240xf32>
      %155 = tpu.concatenate %153, %154 in 1 : vector<2x16xf32>, vector<2x240xf32> -> vector<2x256xf32>
      %c17 = arith.constant 17 : index
      %c0_57 = arith.constant 0 : index
      %c0_58 = arith.constant 0 : index
      %156 = vector.load %arg2[%c17, %c0_57, %c0_58] : memref<49x2x256xf32, #tpu.memory_space<vmem>>, vector<1x2x256xf32>
      %157 = vector.shape_cast %156 : vector<1x2x256xf32> to vector<2x256xf32>
      %158 = arith.mulf %157, %155 : vector<2x256xf32>
      %159 = arith.addf %152, %158 : vector<2x256xf32>
      %160 = vector.extract_strided_slice %32 {offsets = [0, 241], sizes = [2, 15], strides = [1, 1]} : vector<2x256xf32> to vector<2x15xf32>
      %161 = vector.extract_strided_slice %32 {offsets = [0, 0], sizes = [2, 241], strides = [1, 1]} : vector<2x256xf32> to vector<2x241xf32>
      %162 = tpu.concatenate %160, %161 in 1 : vector<2x15xf32>, vector<2x241xf32> -> vector<2x256xf32>
      %c18 = arith.constant 18 : index
      %c0_59 = arith.constant 0 : index
      %c0_60 = arith.constant 0 : index
      %163 = vector.load %arg2[%c18, %c0_59, %c0_60] : memref<49x2x256xf32, #tpu.memory_space<vmem>>, vector<1x2x256xf32>
      %164 = vector.shape_cast %163 : vector<1x2x256xf32> to vector<2x256xf32>
      %165 = arith.mulf %164, %162 : vector<2x256xf32>
      %166 = arith.addf %159, %165 : vector<2x256xf32>
      %167 = vector.extract_strided_slice %32 {offsets = [0, 242], sizes = [2, 14], strides = [1, 1]} : vector<2x256xf32> to vector<2x14xf32>
      %168 = vector.extract_strided_slice %32 {offsets = [0, 0], sizes = [2, 242], strides = [1, 1]} : vector<2x256xf32> to vector<2x242xf32>
      %169 = tpu.concatenate %167, %168 in 1 : vector<2x14xf32>, vector<2x242xf32> -> vector<2x256xf32>
      %c19 = arith.constant 19 : index
      %c0_61 = arith.constant 0 : index
      %c0_62 = arith.constant 0 : index
      %170 = vector.load %arg2[%c19, %c0_61, %c0_62] : memref<49x2x256xf32, #tpu.memory_space<vmem>>, vector<1x2x256xf32>
      %171 = vector.shape_cast %170 : vector<1x2x256xf32> to vector<2x256xf32>
      %172 = arith.mulf %171, %169 : vector<2x256xf32>
      %173 = arith.addf %166, %172 : vector<2x256xf32>
      %174 = vector.extract_strided_slice %32 {offsets = [0, 243], sizes = [2, 13], strides = [1, 1]} : vector<2x256xf32> to vector<2x13xf32>
      %175 = vector.extract_strided_slice %32 {offsets = [0, 0], sizes = [2, 243], strides = [1, 1]} : vector<2x256xf32> to vector<2x243xf32>
      %176 = tpu.concatenate %174, %175 in 1 : vector<2x13xf32>, vector<2x243xf32> -> vector<2x256xf32>
      %c20 = arith.constant 20 : index
      %c0_63 = arith.constant 0 : index
      %c0_64 = arith.constant 0 : index
      %177 = vector.load %arg2[%c20, %c0_63, %c0_64] : memref<49x2x256xf32, #tpu.memory_space<vmem>>, vector<1x2x256xf32>
      %178 = vector.shape_cast %177 : vector<1x2x256xf32> to vector<2x256xf32>
      %179 = arith.mulf %178, %176 : vector<2x256xf32>
      %180 = arith.addf %173, %179 : vector<2x256xf32>
      %181 = vector.extract_strided_slice %32 {offsets = [0, 253], sizes = [2, 3], strides = [1, 1]} : vector<2x256xf32> to vector<2x3xf32>
      %182 = vector.extract_strided_slice %32 {offsets = [0, 0], sizes = [2, 253], strides = [1, 1]} : vector<2x256xf32> to vector<2x253xf32>
      %183 = tpu.concatenate %181, %182 in 1 : vector<2x3xf32>, vector<2x253xf32> -> vector<2x256xf32>
      %c21 = arith.constant 21 : index
      %c0_65 = arith.constant 0 : index
      %c0_66 = arith.constant 0 : index
      %184 = vector.load %arg2[%c21, %c0_65, %c0_66] : memref<49x2x256xf32, #tpu.memory_space<vmem>>, vector<1x2x256xf32>
      %185 = vector.shape_cast %184 : vector<1x2x256xf32> to vector<2x256xf32>
      %186 = arith.mulf %185, %183 : vector<2x256xf32>
      %187 = arith.addf %180, %186 : vector<2x256xf32>
      %188 = vector.extract_strided_slice %32 {offsets = [0, 254], sizes = [2, 2], strides = [1, 1]} : vector<2x256xf32> to vector<2x2xf32>
      %189 = vector.extract_strided_slice %32 {offsets = [0, 0], sizes = [2, 254], strides = [1, 1]} : vector<2x256xf32> to vector<2x254xf32>
      %190 = tpu.concatenate %188, %189 in 1 : vector<2x2xf32>, vector<2x254xf32> -> vector<2x256xf32>
      %c22 = arith.constant 22 : index
      %c0_67 = arith.constant 0 : index
      %c0_68 = arith.constant 0 : index
      %191 = vector.load %arg2[%c22, %c0_67, %c0_68] : memref<49x2x256xf32, #tpu.memory_space<vmem>>, vector<1x2x256xf32>
      %192 = vector.shape_cast %191 : vector<1x2x256xf32> to vector<2x256xf32>
      %193 = arith.mulf %192, %190 : vector<2x256xf32>
      %194 = arith.addf %187, %193 : vector<2x256xf32>
      %195 = vector.extract_strided_slice %32 {offsets = [0, 255], sizes = [2, 1], strides = [1, 1]} : vector<2x256xf32> to vector<2x1xf32>
      %196 = vector.extract_strided_slice %32 {offsets = [0, 0], sizes = [2, 255], strides = [1, 1]} : vector<2x256xf32> to vector<2x255xf32>
      %197 = tpu.concatenate %195, %196 in 1 : vector<2x1xf32>, vector<2x255xf32> -> vector<2x256xf32>
      %c23 = arith.constant 23 : index
      %c0_69 = arith.constant 0 : index
      %c0_70 = arith.constant 0 : index
      %198 = vector.load %arg2[%c23, %c0_69, %c0_70] : memref<49x2x256xf32, #tpu.memory_space<vmem>>, vector<1x2x256xf32>
      %199 = vector.shape_cast %198 : vector<1x2x256xf32> to vector<2x256xf32>
      %200 = arith.mulf %199, %197 : vector<2x256xf32>
      %201 = arith.addf %194, %200 : vector<2x256xf32>
      %c24 = arith.constant 24 : index
      %c0_71 = arith.constant 0 : index
      %c0_72 = arith.constant 0 : index
      %202 = vector.load %arg2[%c24, %c0_71, %c0_72] : memref<49x2x256xf32, #tpu.memory_space<vmem>>, vector<1x2x256xf32>
      %203 = vector.shape_cast %202 : vector<1x2x256xf32> to vector<2x256xf32>
      %204 = arith.mulf %203, %32 : vector<2x256xf32>
      %205 = arith.addf %201, %204 : vector<2x256xf32>
      %206 = vector.extract_strided_slice %32 {offsets = [0, 1], sizes = [2, 255], strides = [1, 1]} : vector<2x256xf32> to vector<2x255xf32>
      %207 = vector.extract_strided_slice %32 {offsets = [0, 0], sizes = [2, 1], strides = [1, 1]} : vector<2x256xf32> to vector<2x1xf32>
      %208 = tpu.concatenate %206, %207 in 1 : vector<2x255xf32>, vector<2x1xf32> -> vector<2x256xf32>
      %c25 = arith.constant 25 : index
      %c0_73 = arith.constant 0 : index
      %c0_74 = arith.constant 0 : index
      %209 = vector.load %arg2[%c25, %c0_73, %c0_74] : memref<49x2x256xf32, #tpu.memory_space<vmem>>, vector<1x2x256xf32>
      %210 = vector.shape_cast %209 : vector<1x2x256xf32> to vector<2x256xf32>
      %211 = arith.mulf %210, %208 : vector<2x256xf32>
      %212 = arith.addf %205, %211 : vector<2x256xf32>
      %213 = vector.extract_strided_slice %32 {offsets = [0, 2], sizes = [2, 254], strides = [1, 1]} : vector<2x256xf32> to vector<2x254xf32>
      %214 = vector.extract_strided_slice %32 {offsets = [0, 0], sizes = [2, 2], strides = [1, 1]} : vector<2x256xf32> to vector<2x2xf32>
      %215 = tpu.concatenate %213, %214 in 1 : vector<2x254xf32>, vector<2x2xf32> -> vector<2x256xf32>
      %c26 = arith.constant 26 : index
      %c0_75 = arith.constant 0 : index
      %c0_76 = arith.constant 0 : index
      %216 = vector.load %arg2[%c26, %c0_75, %c0_76] : memref<49x2x256xf32, #tpu.memory_space<vmem>>, vector<1x2x256xf32>
      %217 = vector.shape_cast %216 : vector<1x2x256xf32> to vector<2x256xf32>
      %218 = arith.mulf %217, %215 : vector<2x256xf32>
      %219 = arith.addf %212, %218 : vector<2x256xf32>
      %220 = vector.extract_strided_slice %32 {offsets = [0, 3], sizes = [2, 253], strides = [1, 1]} : vector<2x256xf32> to vector<2x253xf32>
      %221 = vector.extract_strided_slice %32 {offsets = [0, 0], sizes = [2, 3], strides = [1, 1]} : vector<2x256xf32> to vector<2x3xf32>
      %222 = tpu.concatenate %220, %221 in 1 : vector<2x253xf32>, vector<2x3xf32> -> vector<2x256xf32>
      %c27 = arith.constant 27 : index
      %c0_77 = arith.constant 0 : index
      %c0_78 = arith.constant 0 : index
      %223 = vector.load %arg2[%c27, %c0_77, %c0_78] : memref<49x2x256xf32, #tpu.memory_space<vmem>>, vector<1x2x256xf32>
      %224 = vector.shape_cast %223 : vector<1x2x256xf32> to vector<2x256xf32>
      %225 = arith.mulf %224, %222 : vector<2x256xf32>
      %226 = arith.addf %219, %225 : vector<2x256xf32>
      %227 = vector.extract_strided_slice %32 {offsets = [0, 13], sizes = [2, 243], strides = [1, 1]} : vector<2x256xf32> to vector<2x243xf32>
      %228 = vector.extract_strided_slice %32 {offsets = [0, 0], sizes = [2, 13], strides = [1, 1]} : vector<2x256xf32> to vector<2x13xf32>
      %229 = tpu.concatenate %227, %228 in 1 : vector<2x243xf32>, vector<2x13xf32> -> vector<2x256xf32>
      %c28 = arith.constant 28 : index
      %c0_79 = arith.constant 0 : index
      %c0_80 = arith.constant 0 : index
      %230 = vector.load %arg2[%c28, %c0_79, %c0_80] : memref<49x2x256xf32, #tpu.memory_space<vmem>>, vector<1x2x256xf32>
      %231 = vector.shape_cast %230 : vector<1x2x256xf32> to vector<2x256xf32>
      %232 = arith.mulf %231, %229 : vector<2x256xf32>
      %233 = arith.addf %226, %232 : vector<2x256xf32>
      %234 = vector.extract_strided_slice %32 {offsets = [0, 14], sizes = [2, 242], strides = [1, 1]} : vector<2x256xf32> to vector<2x242xf32>
      %235 = vector.extract_strided_slice %32 {offsets = [0, 0], sizes = [2, 14], strides = [1, 1]} : vector<2x256xf32> to vector<2x14xf32>
      %236 = tpu.concatenate %234, %235 in 1 : vector<2x242xf32>, vector<2x14xf32> -> vector<2x256xf32>
      %c29 = arith.constant 29 : index
      %c0_81 = arith.constant 0 : index
      %c0_82 = arith.constant 0 : index
      %237 = vector.load %arg2[%c29, %c0_81, %c0_82] : memref<49x2x256xf32, #tpu.memory_space<vmem>>, vector<1x2x256xf32>
      %238 = vector.shape_cast %237 : vector<1x2x256xf32> to vector<2x256xf32>
      %239 = arith.mulf %238, %236 : vector<2x256xf32>
      %240 = arith.addf %233, %239 : vector<2x256xf32>
      %241 = vector.extract_strided_slice %32 {offsets = [0, 15], sizes = [2, 241], strides = [1, 1]} : vector<2x256xf32> to vector<2x241xf32>
      %242 = vector.extract_strided_slice %32 {offsets = [0, 0], sizes = [2, 15], strides = [1, 1]} : vector<2x256xf32> to vector<2x15xf32>
      %243 = tpu.concatenate %241, %242 in 1 : vector<2x241xf32>, vector<2x15xf32> -> vector<2x256xf32>
      %c30 = arith.constant 30 : index
      %c0_83 = arith.constant 0 : index
      %c0_84 = arith.constant 0 : index
      %244 = vector.load %arg2[%c30, %c0_83, %c0_84] : memref<49x2x256xf32, #tpu.memory_space<vmem>>, vector<1x2x256xf32>
      %245 = vector.shape_cast %244 : vector<1x2x256xf32> to vector<2x256xf32>
      %246 = arith.mulf %245, %243 : vector<2x256xf32>
      %247 = arith.addf %240, %246 : vector<2x256xf32>
      %248 = vector.extract_strided_slice %32 {offsets = [0, 16], sizes = [2, 240], strides = [1, 1]} : vector<2x256xf32> to vector<2x240xf32>
      %249 = vector.extract_strided_slice %32 {offsets = [0, 0], sizes = [2, 16], strides = [1, 1]} : vector<2x256xf32> to vector<2x16xf32>
      %250 = tpu.concatenate %248, %249 in 1 : vector<2x240xf32>, vector<2x16xf32> -> vector<2x256xf32>
      %c31 = arith.constant 31 : index
      %c0_85 = arith.constant 0 : index
      %c0_86 = arith.constant 0 : index
      %251 = vector.load %arg2[%c31, %c0_85, %c0_86] : memref<49x2x256xf32, #tpu.memory_space<vmem>>, vector<1x2x256xf32>
      %252 = vector.shape_cast %251 : vector<1x2x256xf32> to vector<2x256xf32>
      %253 = arith.mulf %252, %250 : vector<2x256xf32>
      %254 = arith.addf %247, %253 : vector<2x256xf32>
      %255 = vector.extract_strided_slice %32 {offsets = [0, 17], sizes = [2, 239], strides = [1, 1]} : vector<2x256xf32> to vector<2x239xf32>
      %256 = vector.extract_strided_slice %32 {offsets = [0, 0], sizes = [2, 17], strides = [1, 1]} : vector<2x256xf32> to vector<2x17xf32>
      %257 = tpu.concatenate %255, %256 in 1 : vector<2x239xf32>, vector<2x17xf32> -> vector<2x256xf32>
      %c32 = arith.constant 32 : index
      %c0_87 = arith.constant 0 : index
      %c0_88 = arith.constant 0 : index
      %258 = vector.load %arg2[%c32, %c0_87, %c0_88] : memref<49x2x256xf32, #tpu.memory_space<vmem>>, vector<1x2x256xf32>
      %259 = vector.shape_cast %258 : vector<1x2x256xf32> to vector<2x256xf32>
      %260 = arith.mulf %259, %257 : vector<2x256xf32>
      %261 = arith.addf %254, %260 : vector<2x256xf32>
      %262 = vector.extract_strided_slice %32 {offsets = [0, 18], sizes = [2, 238], strides = [1, 1]} : vector<2x256xf32> to vector<2x238xf32>
      %263 = vector.extract_strided_slice %32 {offsets = [0, 0], sizes = [2, 18], strides = [1, 1]} : vector<2x256xf32> to vector<2x18xf32>
      %264 = tpu.concatenate %262, %263 in 1 : vector<2x238xf32>, vector<2x18xf32> -> vector<2x256xf32>
      %c33 = arith.constant 33 : index
      %c0_89 = arith.constant 0 : index
      %c0_90 = arith.constant 0 : index
      %265 = vector.load %arg2[%c33, %c0_89, %c0_90] : memref<49x2x256xf32, #tpu.memory_space<vmem>>, vector<1x2x256xf32>
      %266 = vector.shape_cast %265 : vector<1x2x256xf32> to vector<2x256xf32>
      %267 = arith.mulf %266, %264 : vector<2x256xf32>
      %268 = arith.addf %261, %267 : vector<2x256xf32>
      %269 = vector.extract_strided_slice %32 {offsets = [0, 19], sizes = [2, 237], strides = [1, 1]} : vector<2x256xf32> to vector<2x237xf32>
      %270 = vector.extract_strided_slice %32 {offsets = [0, 0], sizes = [2, 19], strides = [1, 1]} : vector<2x256xf32> to vector<2x19xf32>
      %271 = tpu.concatenate %269, %270 in 1 : vector<2x237xf32>, vector<2x19xf32> -> vector<2x256xf32>
      %c34 = arith.constant 34 : index
      %c0_91 = arith.constant 0 : index
      %c0_92 = arith.constant 0 : index
      %272 = vector.load %arg2[%c34, %c0_91, %c0_92] : memref<49x2x256xf32, #tpu.memory_space<vmem>>, vector<1x2x256xf32>
      %273 = vector.shape_cast %272 : vector<1x2x256xf32> to vector<2x256xf32>
      %274 = arith.mulf %273, %271 : vector<2x256xf32>
      %275 = arith.addf %268, %274 : vector<2x256xf32>
      %276 = vector.extract_strided_slice %32 {offsets = [0, 29], sizes = [2, 227], strides = [1, 1]} : vector<2x256xf32> to vector<2x227xf32>
      %277 = vector.extract_strided_slice %32 {offsets = [0, 0], sizes = [2, 29], strides = [1, 1]} : vector<2x256xf32> to vector<2x29xf32>
      %278 = tpu.concatenate %276, %277 in 1 : vector<2x227xf32>, vector<2x29xf32> -> vector<2x256xf32>
      %c35 = arith.constant 35 : index
      %c0_93 = arith.constant 0 : index
      %c0_94 = arith.constant 0 : index
      %279 = vector.load %arg2[%c35, %c0_93, %c0_94] : memref<49x2x256xf32, #tpu.memory_space<vmem>>, vector<1x2x256xf32>
      %280 = vector.shape_cast %279 : vector<1x2x256xf32> to vector<2x256xf32>
      %281 = arith.mulf %280, %278 : vector<2x256xf32>
      %282 = arith.addf %275, %281 : vector<2x256xf32>
      %283 = vector.extract_strided_slice %32 {offsets = [0, 30], sizes = [2, 226], strides = [1, 1]} : vector<2x256xf32> to vector<2x226xf32>
      %284 = vector.extract_strided_slice %32 {offsets = [0, 0], sizes = [2, 30], strides = [1, 1]} : vector<2x256xf32> to vector<2x30xf32>
      %285 = tpu.concatenate %283, %284 in 1 : vector<2x226xf32>, vector<2x30xf32> -> vector<2x256xf32>
      %c36 = arith.constant 36 : index
      %c0_95 = arith.constant 0 : index
      %c0_96 = arith.constant 0 : index
      %286 = vector.load %arg2[%c36, %c0_95, %c0_96] : memref<49x2x256xf32, #tpu.memory_space<vmem>>, vector<1x2x256xf32>
      %287 = vector.shape_cast %286 : vector<1x2x256xf32> to vector<2x256xf32>
      %288 = arith.mulf %287, %285 : vector<2x256xf32>
      %289 = arith.addf %282, %288 : vector<2x256xf32>
      %290 = vector.extract_strided_slice %32 {offsets = [0, 31], sizes = [2, 225], strides = [1, 1]} : vector<2x256xf32> to vector<2x225xf32>
      %291 = vector.extract_strided_slice %32 {offsets = [0, 0], sizes = [2, 31], strides = [1, 1]} : vector<2x256xf32> to vector<2x31xf32>
      %292 = tpu.concatenate %290, %291 in 1 : vector<2x225xf32>, vector<2x31xf32> -> vector<2x256xf32>
      %c37 = arith.constant 37 : index
      %c0_97 = arith.constant 0 : index
      %c0_98 = arith.constant 0 : index
      %293 = vector.load %arg2[%c37, %c0_97, %c0_98] : memref<49x2x256xf32, #tpu.memory_space<vmem>>, vector<1x2x256xf32>
      %294 = vector.shape_cast %293 : vector<1x2x256xf32> to vector<2x256xf32>
      %295 = arith.mulf %294, %292 : vector<2x256xf32>
      %296 = arith.addf %289, %295 : vector<2x256xf32>
      %297 = vector.extract_strided_slice %32 {offsets = [0, 32], sizes = [2, 224], strides = [1, 1]} : vector<2x256xf32> to vector<2x224xf32>
      %298 = vector.extract_strided_slice %32 {offsets = [0, 0], sizes = [2, 32], strides = [1, 1]} : vector<2x256xf32> to vector<2x32xf32>
      %299 = tpu.concatenate %297, %298 in 1 : vector<2x224xf32>, vector<2x32xf32> -> vector<2x256xf32>
      %c38 = arith.constant 38 : index
      %c0_99 = arith.constant 0 : index
      %c0_100 = arith.constant 0 : index
      %300 = vector.load %arg2[%c38, %c0_99, %c0_100] : memref<49x2x256xf32, #tpu.memory_space<vmem>>, vector<1x2x256xf32>
      %301 = vector.shape_cast %300 : vector<1x2x256xf32> to vector<2x256xf32>
      %302 = arith.mulf %301, %299 : vector<2x256xf32>
      %303 = arith.addf %296, %302 : vector<2x256xf32>
      %304 = vector.extract_strided_slice %32 {offsets = [0, 33], sizes = [2, 223], strides = [1, 1]} : vector<2x256xf32> to vector<2x223xf32>
      %305 = vector.extract_strided_slice %32 {offsets = [0, 0], sizes = [2, 33], strides = [1, 1]} : vector<2x256xf32> to vector<2x33xf32>
      %306 = tpu.concatenate %304, %305 in 1 : vector<2x223xf32>, vector<2x33xf32> -> vector<2x256xf32>
      %c39 = arith.constant 39 : index
      %c0_101 = arith.constant 0 : index
      %c0_102 = arith.constant 0 : index
      %307 = vector.load %arg2[%c39, %c0_101, %c0_102] : memref<49x2x256xf32, #tpu.memory_space<vmem>>, vector<1x2x256xf32>
      %308 = vector.shape_cast %307 : vector<1x2x256xf32> to vector<2x256xf32>
      %309 = arith.mulf %308, %306 : vector<2x256xf32>
      %310 = arith.addf %303, %309 : vector<2x256xf32>
      %311 = vector.extract_strided_slice %32 {offsets = [0, 34], sizes = [2, 222], strides = [1, 1]} : vector<2x256xf32> to vector<2x222xf32>
      %312 = vector.extract_strided_slice %32 {offsets = [0, 0], sizes = [2, 34], strides = [1, 1]} : vector<2x256xf32> to vector<2x34xf32>
      %313 = tpu.concatenate %311, %312 in 1 : vector<2x222xf32>, vector<2x34xf32> -> vector<2x256xf32>
      %c40 = arith.constant 40 : index
      %c0_103 = arith.constant 0 : index
      %c0_104 = arith.constant 0 : index
      %314 = vector.load %arg2[%c40, %c0_103, %c0_104] : memref<49x2x256xf32, #tpu.memory_space<vmem>>, vector<1x2x256xf32>
      %315 = vector.shape_cast %314 : vector<1x2x256xf32> to vector<2x256xf32>
      %316 = arith.mulf %315, %313 : vector<2x256xf32>
      %317 = arith.addf %310, %316 : vector<2x256xf32>
      %318 = vector.extract_strided_slice %32 {offsets = [0, 35], sizes = [2, 221], strides = [1, 1]} : vector<2x256xf32> to vector<2x221xf32>
      %319 = vector.extract_strided_slice %32 {offsets = [0, 0], sizes = [2, 35], strides = [1, 1]} : vector<2x256xf32> to vector<2x35xf32>
      %320 = tpu.concatenate %318, %319 in 1 : vector<2x221xf32>, vector<2x35xf32> -> vector<2x256xf32>
      %c41 = arith.constant 41 : index
      %c0_105 = arith.constant 0 : index
      %c0_106 = arith.constant 0 : index
      %321 = vector.load %arg2[%c41, %c0_105, %c0_106] : memref<49x2x256xf32, #tpu.memory_space<vmem>>, vector<1x2x256xf32>
      %322 = vector.shape_cast %321 : vector<1x2x256xf32> to vector<2x256xf32>
      %323 = arith.mulf %322, %320 : vector<2x256xf32>
      %324 = arith.addf %317, %323 : vector<2x256xf32>
      %325 = vector.extract_strided_slice %32 {offsets = [0, 45], sizes = [2, 211], strides = [1, 1]} : vector<2x256xf32> to vector<2x211xf32>
      %326 = vector.extract_strided_slice %32 {offsets = [0, 0], sizes = [2, 45], strides = [1, 1]} : vector<2x256xf32> to vector<2x45xf32>
      %327 = tpu.concatenate %325, %326 in 1 : vector<2x211xf32>, vector<2x45xf32> -> vector<2x256xf32>
      %c42 = arith.constant 42 : index
      %c0_107 = arith.constant 0 : index
      %c0_108 = arith.constant 0 : index
      %328 = vector.load %arg2[%c42, %c0_107, %c0_108] : memref<49x2x256xf32, #tpu.memory_space<vmem>>, vector<1x2x256xf32>
      %329 = vector.shape_cast %328 : vector<1x2x256xf32> to vector<2x256xf32>
      %330 = arith.mulf %329, %327 : vector<2x256xf32>
      %331 = arith.addf %324, %330 : vector<2x256xf32>
      %332 = vector.extract_strided_slice %32 {offsets = [0, 46], sizes = [2, 210], strides = [1, 1]} : vector<2x256xf32> to vector<2x210xf32>
      %333 = vector.extract_strided_slice %32 {offsets = [0, 0], sizes = [2, 46], strides = [1, 1]} : vector<2x256xf32> to vector<2x46xf32>
      %334 = tpu.concatenate %332, %333 in 1 : vector<2x210xf32>, vector<2x46xf32> -> vector<2x256xf32>
      %c43 = arith.constant 43 : index
      %c0_109 = arith.constant 0 : index
      %c0_110 = arith.constant 0 : index
      %335 = vector.load %arg2[%c43, %c0_109, %c0_110] : memref<49x2x256xf32, #tpu.memory_space<vmem>>, vector<1x2x256xf32>
      %336 = vector.shape_cast %335 : vector<1x2x256xf32> to vector<2x256xf32>
      %337 = arith.mulf %336, %334 : vector<2x256xf32>
      %338 = arith.addf %331, %337 : vector<2x256xf32>
      %339 = vector.extract_strided_slice %32 {offsets = [0, 47], sizes = [2, 209], strides = [1, 1]} : vector<2x256xf32> to vector<2x209xf32>
      %340 = vector.extract_strided_slice %32 {offsets = [0, 0], sizes = [2, 47], strides = [1, 1]} : vector<2x256xf32> to vector<2x47xf32>
      %341 = tpu.concatenate %339, %340 in 1 : vector<2x209xf32>, vector<2x47xf32> -> vector<2x256xf32>
      %c44 = arith.constant 44 : index
      %c0_111 = arith.constant 0 : index
      %c0_112 = arith.constant 0 : index
      %342 = vector.load %arg2[%c44, %c0_111, %c0_112] : memref<49x2x256xf32, #tpu.memory_space<vmem>>, vector<1x2x256xf32>
      %343 = vector.shape_cast %342 : vector<1x2x256xf32> to vector<2x256xf32>
      %344 = arith.mulf %343, %341 : vector<2x256xf32>
      %345 = arith.addf %338, %344 : vector<2x256xf32>
      %346 = vector.extract_strided_slice %32 {offsets = [0, 48], sizes = [2, 208], strides = [1, 1]} : vector<2x256xf32> to vector<2x208xf32>
      %347 = vector.extract_strided_slice %32 {offsets = [0, 0], sizes = [2, 48], strides = [1, 1]} : vector<2x256xf32> to vector<2x48xf32>
      %348 = tpu.concatenate %346, %347 in 1 : vector<2x208xf32>, vector<2x48xf32> -> vector<2x256xf32>
      %c45 = arith.constant 45 : index
      %c0_113 = arith.constant 0 : index
      %c0_114 = arith.constant 0 : index
      %349 = vector.load %arg2[%c45, %c0_113, %c0_114] : memref<49x2x256xf32, #tpu.memory_space<vmem>>, vector<1x2x256xf32>
      %350 = vector.shape_cast %349 : vector<1x2x256xf32> to vector<2x256xf32>
      %351 = arith.mulf %350, %348 : vector<2x256xf32>
      %352 = arith.addf %345, %351 : vector<2x256xf32>
      %353 = vector.extract_strided_slice %32 {offsets = [0, 49], sizes = [2, 207], strides = [1, 1]} : vector<2x256xf32> to vector<2x207xf32>
      %354 = vector.extract_strided_slice %32 {offsets = [0, 0], sizes = [2, 49], strides = [1, 1]} : vector<2x256xf32> to vector<2x49xf32>
      %355 = tpu.concatenate %353, %354 in 1 : vector<2x207xf32>, vector<2x49xf32> -> vector<2x256xf32>
      %c46 = arith.constant 46 : index
      %c0_115 = arith.constant 0 : index
      %c0_116 = arith.constant 0 : index
      %356 = vector.load %arg2[%c46, %c0_115, %c0_116] : memref<49x2x256xf32, #tpu.memory_space<vmem>>, vector<1x2x256xf32>
      %357 = vector.shape_cast %356 : vector<1x2x256xf32> to vector<2x256xf32>
      %358 = arith.mulf %357, %355 : vector<2x256xf32>
      %359 = arith.addf %352, %358 : vector<2x256xf32>
      %360 = vector.extract_strided_slice %32 {offsets = [0, 50], sizes = [2, 206], strides = [1, 1]} : vector<2x256xf32> to vector<2x206xf32>
      %361 = vector.extract_strided_slice %32 {offsets = [0, 0], sizes = [2, 50], strides = [1, 1]} : vector<2x256xf32> to vector<2x50xf32>
      %362 = tpu.concatenate %360, %361 in 1 : vector<2x206xf32>, vector<2x50xf32> -> vector<2x256xf32>
      %c47 = arith.constant 47 : index
      %c0_117 = arith.constant 0 : index
      %c0_118 = arith.constant 0 : index
      %363 = vector.load %arg2[%c47, %c0_117, %c0_118] : memref<49x2x256xf32, #tpu.memory_space<vmem>>, vector<1x2x256xf32>
      %364 = vector.shape_cast %363 : vector<1x2x256xf32> to vector<2x256xf32>
      %365 = arith.mulf %364, %362 : vector<2x256xf32>
      %366 = arith.addf %359, %365 : vector<2x256xf32>
      %367 = vector.extract_strided_slice %32 {offsets = [0, 51], sizes = [2, 205], strides = [1, 1]} : vector<2x256xf32> to vector<2x205xf32>
      %368 = vector.extract_strided_slice %32 {offsets = [0, 0], sizes = [2, 51], strides = [1, 1]} : vector<2x256xf32> to vector<2x51xf32>
      %369 = tpu.concatenate %367, %368 in 1 : vector<2x205xf32>, vector<2x51xf32> -> vector<2x256xf32>
      %c48 = arith.constant 48 : index
      %c0_119 = arith.constant 0 : index
      %c0_120 = arith.constant 0 : index
      %370 = vector.load %arg2[%c48, %c0_119, %c0_120] : memref<49x2x256xf32, #tpu.memory_space<vmem>>, vector<1x2x256xf32>
      %371 = vector.shape_cast %370 : vector<1x2x256xf32> to vector<2x256xf32>
      %372 = arith.mulf %371, %369 : vector<2x256xf32>
      %373 = arith.addf %366, %372 : vector<2x256xf32>
      %374 = vector.extract_strided_slice %373 {offsets = [0, 0], sizes = [1, 256], strides = [1, 1]} : vector<2x256xf32> to vector<1x256xf32>
      %375 = vector.shape_cast %374 : vector<1x256xf32> to vector<256xf32>
      %376 = vector.extract_strided_slice %373 {offsets = [1, 0], sizes = [1, 256], strides = [1, 1]} : vector<2x256xf32> to vector<1x256xf32>
      %377 = vector.shape_cast %376 : vector<1x256xf32> to vector<256xf32>
      %378 = arith.addf %375, %377 : vector<256xf32>
      %379 = arith.negf %378 : vector<256xf32>
      %380 = math.exp %379 : vector<256xf32>
      %cst_121 = arith.constant 1.000000e+00 : f32
      %381 = vector.broadcast %cst_121 : f32 to vector<256xf32>
      %382 = arith.addf %381, %380 : vector<256xf32>
      %383 = arith.divf %381, %382 : vector<256xf32>
      %c0_122 = arith.constant 0 : index
      %c0_123 = arith.constant 0 : index
      %c0_124 = arith.constant 0 : index
      %384 = vector.load %arg4[%c0_122, %c0_123, %c0_124] : memref<1x1x256xf32, #tpu.memory_space<vmem>>, vector<1x1x256xf32>
      %385 = vector.shape_cast %384 : vector<1x1x256xf32> to vector<256xf32>
      %386 = vector.shape_cast %383 : vector<256xf32> to vector<1x1x256xf32>
      tpu.vector_store %arg4[%c0_122, %c0_123, %c0_124], %386 {strides = array<i32>} : memref<1x1x256xf32, #tpu.memory_space<vmem>>, vector<1x1x256xf32>,
    } else {
    }
    return
  }
  func.func @transform_0(%arg0: i32, %arg1: i32) -> (i32, i32, i32) {
    %c0_i32 = arith.constant 0 : i32
    %c0_i32_0 = arith.constant 0 : i32
    %c0_i32_1 = arith.constant 0 : i32
    %c0_i32_2 = arith.constant 0 : i32
    return %c0_i32, %c0_i32_0, %c0_i32_1 : i32, i32, i32
  }
  func.func @transform_1(%arg0: i32, %arg1: i32) -> (i32, i32, i32) {
    %c0_i32 = arith.constant 0 : i32
    %c0_i32_0 = arith.constant 0 : i32
    return %arg0, %arg1, %c0_i32 : i32, i32, i32
  }
  func.func @transform_2(%arg0: i32, %arg1: i32) -> (i32, i32, i32) {
    %c0_i32 = arith.constant 0 : i32
    %c0_i32_0 = arith.constant 0 : i32
    %c0_i32_1 = arith.constant 0 : i32
    return %arg0, %c0_i32, %c0_i32_0 : i32, i32, i32
  }
}

</mosaic_0001>

<bundles_post_ra>
// kernel: spatial_attention.1
= control target key start
LH: loop header
LB: loop body
LE: loop exit
PB: predicated region body
PF: predicated region fallthrough
CT: control target
= control target key end

     0   :  { %s1675_s9 = smov 0   ;;  %s1677_s10 = smov 0   ;;  %s2158_s0 = inlined_call_operand.vmem [shape: f32[49,2,256], index: 0, kind: input, shape index: {}]   ;;  %s2159_s1 = inlined_call_operand.vmem [shape: f32[2,8,256], index: 1, kind: input, shape index: {}]   ;;  %s2160_s2 = inlined_call_operand.vmem [shape: f32[2,1,256], index: 2, kind: output, shape index: {}]  }
   0x1   :  { %s1679_s11 = smov 0  }
   0x2 LB: > { %s24_s12 = sadd.s32 1, %s1604_s10  ;;  %p1451_p0 = scmp.ge.s32.totalorder %s1608_s11, 1  ;;  %s1608_s11 = sphi %s1679_s11, %s12_s11   ;;  %s1604_s10 = sphi %s1677_s10, %s2162_s10   ;;  %s1600_s9 = sphi %s1675_s9, %s2161_s9  }
   0x3   : > { %p26_p1 = scmp.ge.s32.totalorder %s24_s12, 2  ;;  %p130_p2 = scmp.lt.s32.totalorder %s1608_s11, 3 }
   0x5   : > { %s2164_s12 = smov (%p26_p1, %s24_s12), 0  ;;  %p131_p3 = pnand %p1451_p0, %p130_p2 }
   0x6   : > { %p155_p4 = scmp.lt.s32.totalorder (!%p131_p3), %s1600_s9, 1  ;;  %s1610_s17 = smov (!%p131_p3), 50  }
   0x7   : > { %134 = sbr.rel (%p131_p3) target bundleno = 382 (0x17e), region = 28  ;;  %s1611_s18 = smov (!%p131_p3), 51  }
   0x8   : > { %s1612_s19 = smov (!%p131_p3), 49   ;;  %s1613_s20 = smov (!%p131_p3), 48  }
   0x9   : > { %s1614_s21 = smov (!%p131_p3), 47   ;;  %s1615_s22 = smov (!%p131_p3), 46  }
   0xa   : > { %s1616_s23 = smov (!%p131_p3), 45   ;;  %s1617_s24 = smov (!%p131_p3), 35  }
   0xb   : > { %s1618_s25 = smov (!%p131_p3), 34   ;;  %s1619_s26 = smov (!%p131_p3), 33  }
   0xc   : > { %v179_v0 = vlaneseq  ;;  %s2166_s9 = smov (!%p155_p4, %s1600_s9), 1  ;;  %vm231_vm1 = vcmask 1040384   ;;  %s1620_s27 = smov 32   ;;  %v1638_v32 = vmov 1983009808   ;;  %vm263_vm2 = vcmask 408576  }
   0xd   : > { %s1507_s13 = sshll.u32 %s2166_s9, 4  ;;  %s1621_s28 = smov 31   ;;  %v249_v33 = vunpack.c.l.s4 %v1638_v32  ;;  %vm241_vm3 = vcmask 416768   ;;  %vm286_vm4 = vcmask 400384   ;;  %v1455_v46 = vld [vmem:[%s2158_s0 + $0x4] sm:$0xf] }
   0xe   : > { %v1696_v1 = vshrl.u32 %v179_v0, 7  ;;  %s163_s16 = scalar_lea.vmem %s2159_s1, %s1507_s13  ;;  %s1622_s29 = smov 30   ;;  %v245_v47 = vld [vmem:[%s2158_s0] sm:$0xf]  ;;  %vm309_vm5 = vcmask 392192   ;;  %vm332_vm6 = vcmask 384000  }
   0xf   : > { %v177_v2 = vld [vmem:[%s163_s16 + $0x8] sm:$0xff]  ;;  %v176_v3 = vld [vmem:[%s163_s16] sm:$0xff]  ;;  %s1623_s30 = smov 29   ;;  %s1624_s3 = smov 19   ;;  %v250_v36 = vunpack.c.0.s8 %v249_v33  ;;  %vm355_vm7 = vcmask 375808   ;;  %vm378_vm8 = vcmask 367616  }
  0x10   : > { %vm183_vm0 = vcmp.lt.s32.totalorder %v1696_v1, 4  ;;  %v211_v5 = vrot.slane %v177_v2, 4  ;;  %v205_v7 = vrot.slane %v176_v3, 4  ;;  %s1625_s4 = smov 18   ;;  %s1626_s5 = smov 17   ;;  %vm401_vm9 = vcmask 285696  }
  0x11   : > { %v185_v4 = vsel %vm183_vm0, %v177_v2, -inf  ;;  %v184_v6 = vsel %vm183_vm0, %v176_v3, -inf  ;;  %s1627_s6 = smov 16   ;;  %s1628_s7 = smov 15   ;;  %v1768_v37 = vsub.s32 %v250_v36, %v1696_v1  ;;  %v1456_v57 = vld [vmem:[%s2158_s0 + $0x8] sm:$0xf] }
  0x12   : > { %v225_v8 = vrot.slane %v185_v4, 4  ;;  %v219_v9 = vrot.slane %v184_v6, 4  ;;  %v212_v10 = vadd.f32 %v211_v5, %v177_v2  ;;  %v206_v11 = vadd.f32 %v205_v7, %v176_v3  ;;  %s1629_s8 = smov 14   ;;  %s1630_s13 = smov 13   ;;  %v1460_v33 = vld [vmem:[%s2158_s0 + $0x18] sm:$0xf] }
  0x13   : > { %s1631_s14 = smov 3   ;;  %s1632_s15 = smov 2   ;;  %vm424_vm10 = vcmask 277504   ;;  %vm447_vm11 = vcmask 269312   ;;  %vm470_vm12 = vcmask 261120   ;;  %vm493_vm13 = vcmask 252928  }
  0x14   : > { %v226_v12 = vmax.f32 %v185_v4, %v225_v8  ;;  %v220_v13 = vmax.f32 %v184_v6, %v219_v9  ;;  %v213_v14 = vrot.slane %v212_v10, 2  ;;  %v207_v15 = vrot.slane %v206_v11, 2  ;;  %s1633_s16 = smov 1   ;;  %v1457_v4 = vld [vmem:[%s2158_s0 + $0xc] sm:$0xf] }
  0x15   : > { %vm516_vm14 = vcmask 244736   ;;  %vm539_vm15 = vcmask 236544   ;;  %vm562_vm0 = vcmask 154624  }
  0x16   : > { %v227_v16 = vrot.slane %v226_v12, 2  ;;  %v221_v17 = vrot.slane %v220_v13, 2  ;;  %v214_v18 = vadd.f32 %v213_v14, %v212_v10  ;;  %v208_v19 = vadd.f32 %v207_v15, %v206_v11 }
  0x18   : > { %v228_v20 = vmax.f32 %v226_v12, %v227_v16  ;;  %v222_v21 = vmax.f32 %v220_v13, %v221_v17  ;;  %v215_v22 = vrot.slane %v214_v18, 1  ;;  %v209_v23 = vrot.slane %v208_v19, 1  ;;  %v1458_v13 = vld [vmem:[%s2158_s0 + $0x10] sm:$0xf] }
  0x1a   : > { %v229_v24 = vrot.slane %v228_v20, 1  ;;  %v223_v25 = vrot.slane %v222_v21, 1  ;;  %v216_v26 = vadd.f32 %v215_v22, %v214_v18  ;;  %v210_v28 = vadd.f32 %v209_v23, %v208_v19  ;;  %v1459_v22 = vld [vmem:[%s2158_s0 + $0x14] sm:$0xf] }
  0x1c   : > { %v230_v27 = vmax.f32 %v228_v20, %v229_v24  ;;  %v224_v29 = vmax.f32 %v222_v21, %v223_v25 }
  0x1e   : > { %v1703_v30 = vsel %vm231_vm1, %v216_v26, %v230_v27  ;;  %v1707_v31 = vsel %vm231_vm1, %v210_v28, %v224_v29  ;;  %vm585_vm1 = vcmask 146432  }
  0x1f   : > { %258 = vrot.lane.b32.xlu1 %v1703_v30, %s1610_s17  ;;  %235 = vrot.lane.b32.xlu0 %v1703_v30, %s1611_s18 }
  0x23   : > { %261 = vrot.lane.b32.xlu1 %v1707_v31, %s1610_s17  ;;  %239 = vrot.lane.b32.xlu0 %v1707_v31, %s1611_s18  ;;  %s1634_s17 = smov 127   ;;  %s1635_s18 = smov 126  }
  0x27   : > { %284 = vrot.lane.b32.xlu1 %v1707_v31, %s1612_s19  ;;  %281 = vrot.lane.b32.xlu0 %v1703_v30, %s1612_s19  ;;  %s1636_s19 = smov 125  }
  0x2b   : > { %307 = vrot.lane.b32.xlu1 %v1707_v31, %s1613_s20  ;;  %304 = vrot.lane.b32.xlu0 %v1703_v30, %s1613_s20  ;;  %s1637_s20 = smov 115  }
  0x2f   : > { %330 = vrot.lane.b32.xlu1 %v1707_v31, %s1614_s21  ;;  %327 = vrot.lane.b32.xlu0 %v1703_v30, %s1614_s21  ;;  %s1639_s21 = smov 114  }
  0x33   : > { %353 = vrot.lane.b32.xlu1 %v1707_v31, %s1615_s22  ;;  %350 = vrot.lane.b32.xlu0 %v1703_v30, %s1615_s22  ;;  %s1640_s22 = smov 113  }
  0x37   : > { %376 = vrot.lane.b32.xlu1 %v1707_v31, %s1616_s23  ;;  %373 = vrot.lane.b32.xlu0 %v1703_v30, %s1616_s23  ;;  %s1641_s23 = smov 112  }
  0x3b   : > { %399 = vrot.lane.b32.xlu1 %v1707_v31, %s1617_s24  ;;  %396 = vrot.lane.b32.xlu0 %v1703_v30, %s1617_s24 }
  0x3f   : > { %422 = vrot.lane.b32.xlu1 %v1707_v31, %s1618_s25  ;;  %419 = vrot.lane.b32.xlu0 %v1703_v30, %s1618_s25  ;;  %s1649_s25 = smov 95  }
  0x43   : > { %445 = vrot.lane.b32.xlu1 %v1707_v31, %s1619_s26  ;;  %442 = vrot.lane.b32.xlu0 %v1703_v30, %s1619_s26 }
  0x47   : > { %468 = vrot.lane.b32.xlu1 %v1707_v31, %s1620_s27  ;;  %465 = vrot.lane.b32.xlu0 %v1703_v30, %s1620_s27 }
  0x4b   : > { %491 = vrot.lane.b32.xlu1 %v1707_v31, %s1621_s28  ;;  %488 = vrot.lane.b32.xlu0 %v1703_v30, %s1621_s28  ;;  %s1642_s28 = smov 111  }
  0x4f   : > { %514 = vrot.lane.b32.xlu1 %v1707_v31, %s1622_s29  ;;  %511 = vrot.lane.b32.xlu0 %v1703_v30, %s1622_s29 }
  0x53   : > { %537 = vrot.lane.b32.xlu1 %v1707_v31, %s1623_s30  ;;  %534 = vrot.lane.b32.xlu0 %v1703_v30, %s1623_s30 }
  0x57   : > { %560 = vrot.lane.b32.xlu1 %v1707_v31, %s1624_s3  ;;  %557 = vrot.lane.b32.xlu0 %v1703_v30, %s1624_s3  ;;  %s1643_s3 = smov 110  }
  0x5b   : > { %583 = vrot.lane.b32.xlu1 %v1707_v31, %s1625_s4  ;;  %580 = vrot.lane.b32.xlu0 %v1703_v30, %s1625_s4 }
  0x5f   : > { %606 = vrot.lane.b32.xlu1 %v1707_v31, %s1626_s5  ;;  %603 = vrot.lane.b32.xlu0 %v1703_v30, %s1626_s5 }
  0x63   : > { %629 = vrot.lane.b32.xlu1 %v1707_v31, %s1627_s6  ;;  %626 = vrot.lane.b32.xlu0 %v1703_v30, %s1627_s6  ;;  %s1644_s6 = smov 109  }
  0x67   : > { %652 = vrot.lane.b32.xlu1 %v1707_v31, %s1628_s7  ;;  %649 = vrot.lane.b32.xlu0 %v1703_v30, %s1628_s7 }
  0x6b   : > { %675 = vrot.lane.b32.xlu1 %v1707_v31, %s1629_s8  ;;  %672 = vrot.lane.b32.xlu0 %v1703_v30, %s1629_s8 }
  0x6f   : > { %698 = vrot.lane.b32.xlu1 %v1707_v31, %s1630_s13  ;;  %695 = vrot.lane.b32.xlu0 %v1703_v30, %s1630_s13  ;;  %s1645_s13 = smov 99  }
  0x73   : > { %721 = vrot.lane.b32.xlu1 %v1707_v31, %s1631_s14  ;;  %718 = vrot.lane.b32.xlu0 %v1703_v30, %s1631_s14 }
  0x77   : > { %744 = vrot.lane.b32.xlu1 %v1707_v31, %s1632_s15  ;;  %741 = vrot.lane.b32.xlu0 %v1703_v30, %s1632_s15 }
  0x7b   : > { %767 = vrot.lane.b32.xlu1 %v1707_v31, %s1633_s16  ;;  %764 = vrot.lane.b32.xlu0 %v1703_v30, %s1633_s16  ;;  %s1646_s16 = smov 98  }
  0x7f   : > { %802 = vrot.lane.b32.xlu1 %v1703_v30, %s1634_s17  ;;  %800 = vrot.lane.b32.xlu0 %v1707_v31, %s1634_s17 }
  0x83   : > { %825 = vrot.lane.b32.xlu1 %v1703_v30, %s1635_s18  ;;  %823 = vrot.lane.b32.xlu0 %v1707_v31, %s1635_s18 }
  0x87   : > { %848 = vrot.lane.b32.xlu1 %v1703_v30, %s1636_s19  ;;  %846 = vrot.lane.b32.xlu0 %v1707_v31, %s1636_s19  ;;  %s1647_s19 = smov 97  }
  0x8b   : > { %871 = vrot.lane.b32.xlu1 %v1703_v30, %s1637_s20  ;;  %869 = vrot.lane.b32.xlu0 %v1707_v31, %s1637_s20  ;;  %s1656_s20 = smov 79  }
  0x8f   : > { %894 = vrot.lane.b32.xlu1 %v1703_v30, %s1639_s21  ;;  %892 = vrot.lane.b32.xlu0 %v1707_v31, %s1639_s21  ;;  %s1657_s21 = smov 78  }
  0x91   : > { %v259_v34 = vpop.permute.xlu1 %258  ;;  %v236_v35 = vpop.permute.xlu0 %235 }
  0x93   : > { %917 = vrot.lane.b32.xlu1 %v1703_v30, %s1640_s22  ;;  %915 = vrot.lane.b32.xlu0 %v1707_v31, %s1640_s22  ;;  %s1648_s22 = smov 96  }
  0x95   : > { %v262_v38 = vpop.permute.xlu1 %261  ;;  %v240_v39 = vpop.permute.xlu0 %239 }
  0x96   : > { %v264_v40 = vsel %vm263_vm2, %v262_v38, %v259_v34  ;;  %v266_v41 = vsel %vm263_vm2, %v259_v34, %v262_v38  ;;  %v242_v42 = vsel %vm241_vm3, %v240_v39, %v236_v35  ;;  %v244_v43 = vsel %vm241_vm3, %v236_v35, %v240_v39 }
  0x97   : > { %v270_v44 = vcombine.low %v266_v41, %v264_v40  ;;  %v247_v45 = vcombine.low %v244_v43, %v242_v42  ;;  %940 = vrot.lane.b32.xlu1 %v1703_v30, %s1641_s23  ;;  %938 = vrot.lane.b32.xlu0 %v1707_v31, %s1641_s23  ;;  %v1461_v43 = vld [vmem:[%s2158_s0 + $0x1c] sm:$0xf]  ;;  %vm608_vm2 = vcmask 138240   ;;  %vm631_vm3 = vcmask 130048  }
  0x99   : > { %v277_v48 = vrot.slane %v270_v44, %v1768_v37  ;;  %v254_v49 = vrot.slane %v247_v45, %v1768_v37  ;;  %v285_v50 = vpop.permute.xlu1 %284  ;;  %v282_v51 = vpop.permute.xlu0 %281 }
  0x9a   : > { %v287_v52 = vsel %vm286_vm4, %v285_v50, %v282_v51  ;;  %v289_v53 = vsel %vm286_vm4, %v282_v51, %v285_v50  ;;  %vm654_vm4 = vcmask 121856  }
  0x9b   : > { %v279_v54 = vmul.f32 %v1455_v46, %v277_v48  ;;  %v256_v55 = vmul.f32 %v254_v49, %v245_v47  ;;  %v293_v56 = vcombine.low %v289_v53, %v287_v52  ;;  %963 = vrot.lane.b32.xlu1 %v1703_v30, %s1642_s28  ;;  %961 = vrot.lane.b32.xlu0 %v1707_v31, %s1642_s28  ;;  %v1462_v52 = vld [vmem:[%s2158_s0 + $0x20] sm:$0xf]  ;;  %s1650_s28 = smov 94  }
  0x9d   : > { %v280_v58 = vadd.f32 %v279_v54, %v256_v55  ;;  %v300_v59 = vrot.slane %v293_v56, %v1768_v37  ;;  %v308_v60 = vpop.permute.xlu1 %307  ;;  %v305_v61 = vpop.permute.xlu0 %304 }
  0x9e   : > { %v310_v62 = vsel %vm309_vm5, %v308_v60, %v305_v61  ;;  %v312_v63 = vsel %vm309_vm5, %v305_v61, %v308_v60  ;;  %v1463_v61 = vld [vmem:[%s2158_s0 + $0x24] sm:$0xf]  ;;  %vm677_vm5 = vcmask 113664  }
  0x9f   : > { %v302_v2 = vmul.f32 %v1456_v57, %v300_v59  ;;  %v316_v3 = vcombine.low %v312_v63, %v310_v62  ;;  %986 = vrot.lane.b32.xlu1 %v1703_v30, %s1643_s3  ;;  %984 = vrot.lane.b32.xlu0 %v1707_v31, %s1643_s3  ;;  %s1651_s3 = smov 93  }
  0xa1   : > { %v303_v5 = vadd.f32 %v302_v2, %v280_v58  ;;  %v323_v6 = vrot.slane %v316_v3, %v1768_v37  ;;  %v331_v7 = vpop.permute.xlu1 %330  ;;  %v328_v8 = vpop.permute.xlu0 %327 }
  0xa2   : > { %v333_v9 = vsel %vm332_vm6, %v331_v7, %v328_v8  ;;  %v335_v10 = vsel %vm332_vm6, %v328_v8, %v331_v7  ;;  %v1464_v8 = vld [vmem:[%s2158_s0 + $0x28] sm:$0xf]  ;;  %vm700_vm6 = vcmask 105472  }
  0xa3   : > { %v325_v11 = vmul.f32 %v1457_v4, %v323_v6  ;;  %v339_v12 = vcombine.low %v335_v10, %v333_v9  ;;  %1009 = vrot.lane.b32.xlu1 %v1703_v30, %s1644_s6  ;;  %1007 = vrot.lane.b32.xlu0 %v1707_v31, %s1644_s6  ;;  %s1652_s6 = smov 83  }
  0xa5   : > { %v326_v14 = vadd.f32 %v325_v11, %v303_v5  ;;  %v346_v15 = vrot.slane %v339_v12, %v1768_v37  ;;  %v354_v16 = vpop.permute.xlu1 %353  ;;  %v351_v17 = vpop.permute.xlu0 %350 }
  0xa6   : > { %v356_v18 = vsel %vm355_vm7, %v354_v16, %v351_v17  ;;  %v358_v19 = vsel %vm355_vm7, %v351_v17, %v354_v16  ;;  %v1465_v17 = vld [vmem:[%s2158_s0 + $0x2c] sm:$0xf]  ;;  %vm723_vm7 = vcmask 23552  }
  0xa7   : > { %v348_v20 = vmul.f32 %v1458_v13, %v346_v15  ;;  %v362_v21 = vcombine.low %v358_v19, %v356_v18  ;;  %1032 = vrot.lane.b32.xlu1 %v1703_v30, %s1645_s13  ;;  %1030 = vrot.lane.b32.xlu0 %v1707_v31, %s1645_s13  ;;  %s1653_s13 = smov 82  }
  0xa9   : > { %v349_v23 = vadd.f32 %v348_v20, %v326_v14  ;;  %v369_v24 = vrot.slane %v362_v21, %v1768_v37  ;;  %v377_v25 = vpop.permute.xlu1 %376  ;;  %v374_v26 = vpop.permute.xlu0 %373 }
  0xaa   : > { %v379_v27 = vsel %vm378_vm8, %v377_v25, %v374_v26  ;;  %v381_v28 = vsel %vm378_vm8, %v374_v26, %v377_v25  ;;  %v1466_v26 = vld [vmem:[%s2158_s0 + $0x30] sm:$0xf]  ;;  %vm746_vm8 = vcmask 15360  }
  0xab   : > { %v371_v29 = vmul.f32 %v1459_v22, %v369_v24  ;;  %v385_v32 = vcombine.low %v381_v28, %v379_v27  ;;  %1055 = vrot.lane.b32.xlu1 %v1703_v30, %s1646_s16  ;;  %1053 = vrot.lane.b32.xlu0 %v1707_v31, %s1646_s16  ;;  %s1654_s16 = smov 81  }
  0xad   : > { %v372_v34 = vadd.f32 %v371_v29, %v349_v23  ;;  %v392_v35 = vrot.slane %v385_v32, %v1768_v37  ;;  %v400_v36 = vpop.permute.xlu1 %399  ;;  %v397_v38 = vpop.permute.xlu0 %396 }
  0xae   : > { %v402_v39 = vsel %vm401_vm9, %v400_v36, %v397_v38  ;;  %v404_v40 = vsel %vm401_vm9, %v397_v38, %v400_v36  ;;  %v1467_v38 = vld [vmem:[%s2158_s0 + $0x34] sm:$0xf]  ;;  %vm769_vm9 = vcmask 7168  }
  0xaf   : > { %v394_v41 = vmul.f32 %v1460_v33, %v392_v35  ;;  %v408_v42 = vcombine.low %v404_v40, %v402_v39  ;;  %1078 = vrot.lane.b32.xlu1 %v1703_v30, %s1647_s19  ;;  %1076 = vrot.lane.b32.xlu0 %v1707_v31, %s1647_s19  ;;  %s1655_s19 = smov 80  }
  0xb1   : > { %v395_v44 = vadd.f32 %v394_v41, %v372_v34  ;;  %v415_v45 = vrot.slane %v408_v42, %v1768_v37  ;;  %v423_v46 = vpop.permute.xlu1 %422  ;;  %v420_v47 = vpop.permute.xlu0 %419 }
  0xb2   : > { %v425_v48 = vsel %vm424_vm10, %v423_v46, %v420_v47  ;;  %v427_v49 = vsel %vm424_vm10, %v420_v47, %v423_v46  ;;  %v1468_v47 = vld [vmem:[%s2158_s0 + $0x38] sm:$0xf]  ;;  %vm804_vm10 = vcmask 1039360  }
  0xb3   : > { %v417_v50 = vmul.f32 %v1461_v43, %v415_v45  ;;  %v431_v51 = vcombine.low %v427_v49, %v425_v48  ;;  %1101 = vrot.lane.b32.xlu1 %v1703_v30, %s1648_s22  ;;  %1099 = vrot.lane.b32.xlu0 %v1707_v31, %s1648_s22  ;;  %s1658_s22 = smov 77  }
  0xb5   : > { %v418_v53 = vadd.f32 %v417_v50, %v395_v44  ;;  %v438_v54 = vrot.slane %v431_v51, %v1768_v37  ;;  %v446_v55 = vpop.permute.xlu1 %445  ;;  %v443_v56 = vpop.permute.xlu0 %442 }
  0xb6   : > { %v448_v57 = vsel %vm447_vm11, %v446_v55, %v443_v56  ;;  %v450_v58 = vsel %vm447_vm11, %v443_v56, %v446_v55  ;;  %vm827_vm11 = vcmask 1031168  }
  0xb7   : > { %v440_v59 = vmul.f32 %v1462_v52, %v438_v54  ;;  %v454_v60 = vcombine.low %v450_v58, %v448_v57  ;;  %1124 = vrot.lane.b32.xlu1 %v1703_v30, %s1649_s25  ;;  %1122 = vrot.lane.b32.xlu0 %v1707_v31, %s1649_s25 }
  0xb9   : > { %v441_v62 = vadd.f32 %v440_v59, %v418_v53  ;;  %v461_v63 = vrot.slane %v454_v60, %v1768_v37  ;;  %v469_v2 = vpop.permute.xlu1 %468  ;;  %v466_v3 = vpop.permute.xlu0 %465 }
  0xba   : > { %v471_v4 = vsel %vm470_vm12, %v469_v2, %v466_v3  ;;  %v473_v5 = vsel %vm470_vm12, %v466_v3, %v469_v2  ;;  %vm850_vm12 = vcmask 1022976  }
  0xbb   : > { %v463_v6 = vmul.f32 %v1463_v61, %v461_v63  ;;  %v477_v7 = vcombine.low %v473_v5, %v471_v4  ;;  %1147 = vrot.lane.b32.xlu1 %v1703_v30, %s1650_s28  ;;  %1145 = vrot.lane.b32.xlu0 %v1707_v31, %s1650_s28 }
  0xbd   : > { %v464_v9 = vadd.f32 %v463_v6, %v441_v62  ;;  %v484_v10 = vrot.slane %v477_v7, %v1768_v37  ;;  %v492_v11 = vpop.permute.xlu1 %491  ;;  %v489_v12 = vpop.permute.xlu0 %488 }
  0xbe   : > { %v494_v13 = vsel %vm493_vm13, %v492_v11, %v489_v12  ;;  %v496_v14 = vsel %vm493_vm13, %v489_v12, %v492_v11  ;;  %vm873_vm13 = vcmask 941056  }
  0xbf   : > { %v486_v15 = vmul.f32 %v1464_v8, %v484_v10  ;;  %v500_v16 = vcombine.low %v496_v14, %v494_v13  ;;  %1170 = vrot.lane.b32.xlu1 %v1703_v30, %s1651_s3  ;;  %1168 = vrot.lane.b32.xlu0 %v1707_v31, %s1651_s3 }
  0xc1   : > { %v487_v18 = vadd.f32 %v486_v15, %v464_v9  ;;  %v507_v19 = vrot.slane %v500_v16, %v1768_v37  ;;  %v515_v20 = vpop.permute.xlu1 %514  ;;  %v512_v21 = vpop.permute.xlu0 %511 }
  0xc2   : > { %v517_v22 = vsel %vm516_vm14, %v515_v20, %v512_v21  ;;  %v519_v23 = vsel %vm516_vm14, %v512_v21, %v515_v20  ;;  %vm896_vm14 = vcmask 932864  }
  0xc3   : > { %v509_v24 = vmul.f32 %v1465_v17, %v507_v19  ;;  %v523_v25 = vcombine.low %v519_v23, %v517_v22  ;;  %1193 = vrot.lane.b32.xlu1 %v1703_v30, %s1652_s6  ;;  %1191 = vrot.lane.b32.xlu0 %v1707_v31, %s1652_s6 }
  0xc5   : > { %v510_v27 = vadd.f32 %v509_v24, %v487_v18  ;;  %v530_v28 = vrot.slane %v523_v25, %v1768_v37  ;;  %v538_v29 = vpop.permute.xlu1 %537  ;;  %v535_v32 = vpop.permute.xlu0 %534 }
  0xc6   : > { %v540_v33 = vsel %vm539_vm15, %v538_v29, %v535_v32  ;;  %v542_v34 = vsel %vm539_vm15, %v535_v32, %v538_v29  ;;  %vm919_vm15 = vcmask 924672  }
  0xc7   : > { %v532_v35 = vmul.f32 %v1466_v26, %v530_v28  ;;  %v546_v36 = vcombine.low %v542_v34, %v540_v33  ;;  %1216 = vrot.lane.b32.xlu1 %v1703_v30, %s1653_s13  ;;  %1214 = vrot.lane.b32.xlu0 %v1707_v31, %s1653_s13  ;;  %v1469_v34 = vld [vmem:[%s2158_s0 + $0x3c] sm:$0xf] }
  0xc9   : > { %v533_v39 = vadd.f32 %v532_v35, %v510_v27  ;;  %v553_v40 = vrot.slane %v546_v36, %v1768_v37  ;;  %v561_v41 = vpop.permute.xlu1 %560  ;;  %v558_v42 = vpop.permute.xlu0 %557 }
  0xca   : > { %v563_v43 = vsel %vm562_vm0, %v561_v41, %v558_v42  ;;  %v565_v44 = vsel %vm562_vm0, %v558_v42, %v561_v41  ;;  %v1470_v42 = vld [vmem:[%s2158_s0 + $0x40] sm:$0xf]  ;;  %vm942_vm0 = vcmask 916480  }
  0xcb   : > { %v555_v45 = vmul.f32 %v1467_v38, %v553_v40  ;;  %v569_v46 = vcombine.low %v565_v44, %v563_v43  ;;  %1239 = vrot.lane.b32.xlu1 %v1703_v30, %s1654_s16  ;;  %1237 = vrot.lane.b32.xlu0 %v1707_v31, %s1654_s16 }
  0xcd   : > { %v556_v48 = vadd.f32 %v555_v45, %v533_v39  ;;  %v576_v49 = vrot.slane %v569_v46, %v1768_v37  ;;  %v584_v50 = vpop.permute.xlu1 %583  ;;  %v581_v51 = vpop.permute.xlu0 %580 }
  0xce   : > { %v586_v16 = vsel %vm585_vm1, %v584_v50, %v581_v51  ;;  %v588_v17 = vsel %vm585_vm1, %v581_v51, %v584_v50  ;;  %vm965_vm1 = vcmask 908288  }
  0xcf   : > { %v578_v52 = vmul.f32 %v1468_v47, %v576_v49  ;;  %1262 = vrot.lane.b32.xlu1 %v1703_v30, %s1655_s19  ;;  %1260 = vrot.lane.b32.xlu0 %v1707_v31, %s1655_s19  ;;  %v592_v22 = vcombine.low %v588_v17, %v586_v16  ;;  %s1454_s19 = sshll.u32 %s2166_s9, 1 }
  0xd1   : > { %v1860_v53 = vadd.f32 %v578_v52, %v556_v48  ;;  %v607_v54 = vpop.permute.xlu1 %606  ;;  %v604_v55 = vpop.permute.xlu0 %603  ;;  %v599_v32 = vrot.slane %v592_v22, %v1768_v37  ;;  %v1471_v48 = vld [vmem:[%s2158_s0 + $0x44] sm:$0xf]  ;;  %v1474_v22 = vld [vmem:[%s2158_s0 + $0x50] sm:$0xf] }
  0xd2   : > { %v609_v20 = vsel %vm608_vm2, %v607_v54, %v604_v55  ;;  %v611_v21 = vsel %vm608_vm2, %v604_v55, %v607_v54  ;;  %vm988_vm2 = vcmask 900096  }
  0xd3   : > { %1285 = vrot.lane.b32.xlu1 %v1703_v30, %s1656_s20  ;;  %1283 = vrot.lane.b32.xlu0 %v1707_v31, %s1656_s20  ;;  %v615_v25 = vcombine.low %v611_v21, %v609_v20  ;;  %v601_v45 = vmul.f32 %v1469_v34, %v599_v32 }
  0xd5   : > { %v630_v56 = vpop.permute.xlu1 %629  ;;  %v627_v57 = vpop.permute.xlu0 %626  ;;  %v622_v38 = vrot.slane %v615_v25, %v1768_v37 }
  0xd6   : > { %v632_v23 = vsel %vm631_vm3, %v630_v56, %v627_v57  ;;  %v634_v24 = vsel %vm631_vm3, %v627_v57, %v630_v56  ;;  %v1472_v57 = vld [vmem:[%s2158_s0 + $0x48] sm:$0xf]  ;;  %vm1011_vm3 = vcmask 891904  }
  0xd7   : > { %1308 = vrot.lane.b32.xlu1 %v1703_v30, %s1657_s21  ;;  %1306 = vrot.lane.b32.xlu0 %v1707_v31, %s1657_s21  ;;  %v638_v33 = vcombine.low %v634_v24, %v632_v23  ;;  %v624_v51 = vmul.f32 %v1470_v42, %v622_v38 }
  0xd9   : > { %v653_v58 = vpop.permute.xlu1 %652  ;;  %v650_v59 = vpop.permute.xlu0 %649  ;;  %v645_v46 = vrot.slane %v638_v33, %v1768_v37 }
  0xda   : > { %v655_v28 = vsel %vm654_vm4, %v653_v58, %v650_v59  ;;  %v657_v29 = vsel %vm654_vm4, %v650_v59, %v653_v58  ;;  %vm1034_vm4 = vcmask 809984  }
  0xdb   : > { %1331 = vrot.lane.b32.xlu1 %v1703_v30, %s1658_s22  ;;  %1329 = vrot.lane.b32.xlu0 %v1707_v31, %s1658_s22  ;;  %v661_v39 = vcombine.low %v657_v29, %v655_v28  ;;  %s167_s22 = scalar_lea.vmem %s2160_s2, %s1454_s19 }
  0xdd   : > { %v676_v60 = vpop.permute.xlu1 %675  ;;  %v673_v61 = vpop.permute.xlu0 %672  ;;  %v668_v52 = vrot.slane %v661_v39, %v1768_v37 }
  0xde   : > { %v678_v35 = vsel %vm677_vm5, %v676_v60, %v673_v61  ;;  %v680_v36 = vsel %vm677_vm5, %v673_v61, %v676_v60  ;;  %v602_v60 = vadd.f32 %v601_v45, %v1860_v53  ;;  %v647_v61 = vmul.f32 %v1471_v48, %v645_v46 }
  0xdf   : > { %v684_v47 = vcombine.low %v680_v36, %v678_v35  ;;  %v670_v20 = vmul.f32 %v1472_v57, %v668_v52  ;;  %v1476_v35 = vld [vmem:[%s2158_s0 + $0x58] sm:$0xf]  ;;  %v789_v36 = vcombine.low %v1707_v31, %v1703_v30  ;;  %vm1057_vm5 = vcmask 801792  }
  0xe0   : > { %v625_v17 = vadd.f32 %v624_v51, %v602_v60 }
  0xe1   : > { %v699_v62 = vpop.permute.xlu1 %698  ;;  %v696_v63 = vpop.permute.xlu0 %695  ;;  %v796_v31 = vrot.slane %v789_v36, %v1768_v37 }
  0xe2   : > { %v701_v43 = vsel %vm700_vm6, %v699_v62, %v696_v63  ;;  %v703_v44 = vsel %vm700_vm6, %v696_v63, %v699_v62  ;;  %v691_v62 = vrot.slane %v684_v47, %v1768_v37  ;;  %v648_v23 = vadd.f32 %v647_v61, %v625_v17 }
  0xe3   : > { %v707_v54 = vcombine.low %v703_v44, %v701_v43  ;;  %v1477_v43 = vld [vmem:[%s2158_s0 + $0x5c] sm:$0xf]  ;;  %vm1080_vm6 = vcmask 793600  }
  0xe5   : > { %v722_v2 = vpop.permute.xlu1 %721  ;;  %v719_v3 = vpop.permute.xlu0 %718 }
  0xe6   : > { %v724_v49 = vsel %vm723_vm7, %v722_v2, %v719_v3  ;;  %v726_v50 = vsel %vm723_vm7, %v719_v3, %v722_v2  ;;  %v1473_v2 = vld [vmem:[%s2158_s0 + $0x4c] sm:$0xf]  ;;  %vm1103_vm7 = vcmask 785408  }
  0xe7   : > { %v730_v63 = vcombine.low %v726_v50, %v724_v49  ;;  %v693_v24 = vmul.f32 %v1473_v2, %v691_v62 }
  0xe9   : > { %v745_v4 = vpop.permute.xlu1 %744  ;;  %v742_v5 = vpop.permute.xlu0 %741  ;;  %v737_v25 = vrot.slane %v730_v63, %v1768_v37 }
  0xea   : > { %v747_v58 = vsel %vm746_vm8, %v745_v4, %v742_v5  ;;  %v749_v59 = vsel %vm746_vm8, %v742_v5, %v745_v4  ;;  %v714_v4 = vrot.slane %v707_v54, %v1768_v37  ;;  %vm1126_vm8 = vcmask 777216  }
  0xeb   : > { %v753_v5 = vcombine.low %v749_v59, %v747_v58 }
  0xec   : > { %v716_v29 = vmul.f32 %v1474_v22, %v714_v4  ;;  %v1480_v4 = vld [vmem:[%s2158_s0 + $0x68] sm:$0xf] }
  0xed   : > { %v1868_v6 = vpop.permute.xlu1 %767  ;;  %v1870_v7 = vpop.permute.xlu0 %764  ;;  %v760_v32 = vrot.slane %v753_v5, %v1768_v37 }
  0xee   : > { %v770_v3 = vsel %vm769_vm9, %v1868_v6, %v1870_v7  ;;  %v772_v16 = vsel %vm769_vm9, %v1870_v7, %v1868_v6  ;;  %v1475_v6 = vld [vmem:[%s2158_s0 + $0x54] sm:$0xf]  ;;  %v671_v7 = vadd.f32 %v670_v20, %v648_v23  ;;  %vm1149_vm9 = vcmask 769024  }
  0xef   : > { %v776_v28 = vcombine.low %v772_v16, %v770_v3  ;;  %v739_v39 = vmul.f32 %v1475_v6, %v737_v25  ;;  %v762_v47 = vmul.f32 %v1476_v35, %v760_v32  ;;  %v1481_v25 = vld [vmem:[%s2158_s0 + $0x6c] sm:$0xf]  ;;  %v1482_v35 = vld [vmem:[%s2158_s0 + $0x70] sm:$0xf] }
  0xf0   : > { %v694_v38 = vadd.f32 %v693_v24, %v671_v7 }
  0xf1   : > { %v1872_v8 = vpop.permute.xlu1 %802  ;;  %v1874_v9 = vpop.permute.xlu0 %800  ;;  %v783_v42 = vrot.slane %v776_v28, %v1768_v37 }
  0xf2   : > { %v805_v44 = vsel %vm804_vm10, %v1874_v9, %v1872_v8  ;;  %v808_v45 = vsel %vm804_vm10, %v1872_v8, %v1874_v9  ;;  %v717_v46 = vadd.f32 %v716_v29, %v694_v38  ;;  %v1478_v8 = vld [vmem:[%s2158_s0 + $0x60] sm:$0xf]  ;;  %vm1172_vm10 = vcmask 760832  }
  0xf3   : > { %v785_v52 = vmul.f32 %v1477_v43, %v783_v42  ;;  %v812_v9 = vcombine.low %v805_v44, %v808_v45  ;;  %v1483_v43 = vld [vmem:[%s2158_s0 + $0x74] sm:$0xf] }
  0xf4   : > { %v740_v51 = vadd.f32 %v739_v39, %v717_v46 }
  0xf5   : > { %v1876_v10 = vpop.permute.xlu1 %825  ;;  %v1878_v11 = vpop.permute.xlu0 %823  ;;  %v819_v2 = vrot.slane %v812_v9, %v1768_v37 }
  0xf6   : > { %v828_v49 = vsel %vm827_vm11, %v1878_v11, %v1876_v10  ;;  %v831_v50 = vsel %vm827_vm11, %v1876_v10, %v1878_v11  ;;  %v763_v58 = vadd.f32 %v762_v47, %v740_v51  ;;  %v798_v11 = vmul.f32 %v1478_v8, %v796_v31 }
  0xf7   : > { %v835_v59 = vcombine.low %v828_v49, %v831_v50  ;;  %v1484_v50 = vld [vmem:[%s2158_s0 + $0x78] sm:$0xf]  ;;  %vm1195_vm11 = vcmask 678912  }
  0xf8   : > { %v786_v63 = vadd.f32 %v785_v52, %v763_v58 }
  0xf9   : > { %v1880_v12 = vpop.permute.xlu1 %848  ;;  %v1882_v13 = vpop.permute.xlu0 %846  ;;  %v842_v17 = vrot.slane %v835_v59, %v1768_v37 }
  0xfa   : > { %v851_v54 = vsel %vm850_vm12, %v1882_v13, %v1880_v12  ;;  %v854_v57 = vsel %vm850_vm12, %v1880_v12, %v1882_v13  ;;  %v1479_v12 = vld [vmem:[%s2158_s0 + $0x64] sm:$0xf]  ;;  %vm1218_vm12 = vcmask 670720  }
  0xfb   : > { %v858_v3 = vcombine.low %v851_v54, %v854_v57  ;;  %v844_v7 = vmul.f32 %v1480_v4, %v842_v17  ;;  %v1485_v54 = vld [vmem:[%s2158_s0 + $0x7c] sm:$0xf] }
  0xfd   : > { %v1884_v14 = vpop.permute.xlu1 %871  ;;  %v1886_v15 = vpop.permute.xlu0 %869  ;;  %v865_v23 = vrot.slane %v858_v3, %v1768_v37 }
  0xfe   : > { %v874_v61 = vsel %vm873_vm13, %v1886_v15, %v1884_v14  ;;  %v877_v62 = vsel %vm873_vm13, %v1884_v14, %v1886_v15  ;;  %vm1241_vm13 = vcmask 662528  }
  0xff   : > { %v881_v20 = vcombine.low %v874_v61, %v877_v62 }
 0x101   : > { %v1888_v18 = vpop.permute.xlu1 %894  ;;  %v1890_v19 = vpop.permute.xlu0 %892  ;;  %v888_v29 = vrot.slane %v881_v20, %v1768_v37 }
 0x102   : > { %v897_v13 = vsel %vm896_vm14, %v1890_v19, %v1888_v18  ;;  %v900_v16 = vsel %vm896_vm14, %v1888_v18, %v1890_v19  ;;  %v799_v18 = vadd.f32 %v798_v11, %v786_v63  ;;  %v821_v19 = vmul.f32 %v1479_v12, %v819_v2  ;;  %v1486_v63 = vld [vmem:[%s2158_s0 + $0x80] sm:$0xf] }
 0x103   : > { %v904_v24 = vcombine.low %v897_v13, %v900_v16  ;;  %v890_v47 = vmul.f32 %v1482_v35, %v888_v29  ;;  %v1487_v16 = vld [vmem:[%s2158_s0 + $0x84] sm:$0xf]  ;;  %vm1264_vm14 = vcmask 654336  }
 0x105   : > { %v1892_v26 = vpop.permute.xlu1 %917  ;;  %v1894_v27 = vpop.permute.xlu0 %915  ;;  %v911_v39 = vrot.slane %v904_v24, %v1768_v37 }
 0x106   : > { %v920_v5 = vsel %vm919_vm15, %v1894_v27, %v1892_v26  ;;  %v923_v22 = vsel %vm919_vm15, %v1892_v26, %v1894_v27  ;;  %vm1287_vm15 = vcmask 646144  }
 0x107   : > { %v927_v26 = vcombine.low %v920_v5, %v923_v22  ;;  %v913_v52 = vmul.f32 %v1483_v43, %v911_v39 }
 0x109   : > { %v1901_v40 = vpop.permute.xlu1 %940  ;;  %v1903_v41 = vpop.permute.xlu0 %938 }
 0x10a   : > { %v943_v28 = vsel %vm942_vm0, %v1903_v41, %v1901_v40  ;;  %v946_v6 = vsel %vm942_vm0, %v1901_v40, %v1903_v41  ;;  %v822_v40 = vadd.f32 %v821_v19, %v799_v18  ;;  %v867_v41 = vmul.f32 %v1481_v25, %v865_v23  ;;  %v1488_v19 = vld [vmem:[%s2158_s0 + $0x88] sm:$0xf] }
 0x10b   : > { %v950_v42 = vcombine.low %v943_v28, %v946_v6  ;;  %v1489_v6 = vld [vmem:[%s2158_s0 + $0x8c] sm:$0xf]  ;;  %vm1310_vm0 = vcmask 637952  }
 0x10c   : > { %v845_v46 = vadd.f32 %v844_v7, %v822_v40  ;;  %v1490_v40 = vld [vmem:[%s2158_s0 + $0x90] sm:$0xf] }
 0x10d   : > { %v1913_v55 = vpop.permute.xlu1 %963  ;;  %v1915_v56 = vpop.permute.xlu0 %961  ;;  %v957_v8 = vrot.slane %v950_v42, %v1768_v37 }
 0x10e   : > { %v966_v36 = vsel %vm965_vm1, %v1915_v56, %v1913_v55  ;;  %v969_v38 = vsel %vm965_vm1, %v1913_v55, %v1915_v56  ;;  %v934_v55 = vrot.slane %v927_v26, %v1768_v37  ;;  %vm1333_vm1 = vcmask 629760  }
 0x10f   : > { %v973_v56 = vcombine.low %v966_v36, %v969_v38  ;;  %v959_v3 = vmul.f32 %v1485_v54, %v957_v8 }
 0x111   : > { %v1930_v53 = vpop.permute.xlu1 %986  ;;  %v1932_v21 = vpop.permute.xlu0 %984  ;;  %v980_v59 = vrot.slane %v973_v56, %v1768_v37 }
 0x112   : > { %v989_v44 = vsel %vm988_vm2, %v1932_v21, %v1930_v53  ;;  %v992_v45 = vsel %vm988_vm2, %v1930_v53, %v1932_v21  ;;  %v868_v21 = vadd.f32 %v867_v41, %v845_v46  ;;  %v1491_v46 = vld [vmem:[%s2158_s0 + $0x94] sm:$0xf]  ;;  %vm1374_vm2 = vcmp.lt.s32.totalorder %v179_v0, 256 }
 0x113   : > { %v996_v9 = vcombine.low %v989_v44, %v992_v45 }
 0x115   : > { %v1942_v33 = vpop.permute.xlu1 %1009  ;;  %v1944_v34 = vpop.permute.xlu0 %1007  ;;  %v1003_v12 = vrot.slane %v996_v9, %v1768_v37 }
 0x116   : > { %v1012_v51 = vsel %vm1011_vm3, %v1944_v34, %v1942_v33  ;;  %v1015_v53 = vsel %vm1011_vm3, %v1942_v33, %v1944_v34  ;;  %v891_v33 = vadd.f32 %v890_v47, %v868_v21  ;;  %v936_v34 = vmul.f32 %v1484_v50, %v934_v55  ;;  %v1492_v21 = vld [vmem:[%s2158_s0 + $0x98] sm:$0xf] }
 0x117   : > { %v1019_v11 = vcombine.low %v1012_v51, %v1015_v53  ;;  %v1005_v28 = vmul.f32 %v1487_v16, %v1003_v12 }
 0x119   : > { %v1959_v48 = vpop.permute.xlu1 %1032  ;;  %v1961_v30 = vpop.permute.xlu0 %1030  ;;  %v1026_v4 = vrot.slane %v1019_v11, %v1768_v37 }
 0x11a   : > { %v1035_v57 = vsel %vm1034_vm4, %v1961_v30, %v1959_v48  ;;  %v1038_v58 = vsel %vm1034_vm4, %v1959_v48, %v1961_v30  ;;  %v914_v30 = vadd.f32 %v913_v52, %v891_v33  ;;  %v1493_v33 = vld [vmem:[%s2158_s0 + $0x9c] sm:$0xf] }
 0x11b   : > { %v1042_v13 = vcombine.low %v1035_v57, %v1038_v58  ;;  %v1028_v35 = vmul.f32 %v1488_v19, %v1026_v4 }
 0x11d   : > { %v1975_v60 = vpop.permute.xlu1 %1055  ;;  %v1977_v10 = vpop.permute.xlu0 %1053 }
 0x11e   : > { %v1058_v2 = vsel %vm1057_vm5, %v1977_v10, %v1975_v60  ;;  %v1061_v48 = vsel %vm1057_vm5, %v1975_v60, %v1977_v10  ;;  %v937_v60 = vadd.f32 %v936_v34, %v914_v30  ;;  %v982_v10 = vmul.f32 %v1486_v63, %v980_v59  ;;  %v1494_v30 = vld [vmem:[%s2158_s0 + $0xa0] sm:$0xf] }
 0x11f   : > { %v1065_v5 = vcombine.low %v1058_v2, %v1061_v48 }
 0x120   : > { %v960_v25 = vadd.f32 %v959_v3, %v937_v60  ;;  %v1495_v60 = vld [vmem:[%s2158_s0 + $0xa4] sm:$0xf] }
 0x121   : > { %v1992_v14 = vpop.permute.xlu1 %1078  ;;  %v1994_v15 = vpop.permute.xlu0 %1076  ;;  %v1072_v36 = vrot.slane %v1065_v5, %v1768_v37 }
 0x122   : > { %v1081_v17 = vsel %vm1080_vm6, %v1994_v15, %v1992_v14  ;;  %v1084_v20 = vsel %vm1080_vm6, %v1992_v14, %v1994_v15  ;;  %v1049_v14 = vrot.slane %v1042_v13, %v1768_v37  ;;  %v983_v26 = vadd.f32 %v982_v10, %v960_v25 }
 0x123   : > { %v1088_v15 = vcombine.low %v1081_v17, %v1084_v20 }
 0x124   : > { %v1006_v42 = vadd.f32 %v1005_v28, %v983_v26  ;;  %v1051_v43 = vmul.f32 %v1489_v6, %v1049_v14 }
 0x125   : > { %v1102_v27 = vpop.permute.xlu1 %1101  ;;  %v1100_v32 = vpop.permute.xlu0 %1099  ;;  %v1095_v44 = vrot.slane %v1088_v15, %v1768_v37 }
 0x126   : > { %v1104_v23 = vsel %vm1103_vm7, %v1100_v32, %v1102_v27  ;;  %v1107_v24 = vsel %vm1103_vm7, %v1102_v27, %v1100_v32  ;;  %v1029_v56 = vadd.f32 %v1028_v35, %v1006_v42 }
 0x127   : > { %v1111_v27 = vcombine.low %v1104_v23, %v1107_v24  ;;  %v1097_v54 = vmul.f32 %v1491_v46, %v1095_v44  ;;  %v1496_v23 = vld [vmem:[%s2158_s0 + $0xa8] sm:$0xf]  ;;  %v1499_v44 = vld [vmem:[%s2158_s0 + $0xb4] sm:$0xf] }
 0x128   : > { %v1052_v9 = vadd.f32 %v1051_v43, %v1029_v56 }
 0x129   : > { %v1125_v31 = vpop.permute.xlu1 %1124  ;;  %v1123_v49 = vpop.permute.xlu0 %1122 }
 0x12a   : > { %v1127_v7 = vsel %vm1126_vm8, %v1123_v49, %v1125_v31  ;;  %v1130_v29 = vsel %vm1126_vm8, %v1125_v31, %v1123_v49  ;;  %v1074_v31 = vmul.f32 %v1490_v40, %v1072_v36  ;;  %v1118_v49 = vrot.slane %v1111_v27, %v1768_v37 }
 0x12b   : > { %v1134_v45 = vcombine.low %v1127_v7, %v1130_v29  ;;  %v1497_v7 = vld [vmem:[%s2158_s0 + $0xac] sm:$0xf] }
 0x12c   : > { %v1075_v11 = vadd.f32 %v1074_v31, %v1052_v9  ;;  %v1500_v31 = vld [vmem:[%s2158_s0 + $0xb8] sm:$0xf] }
 0x12d   : > { %v1148_v61 = vpop.permute.xlu1 %1147  ;;  %v1146_v62 = vpop.permute.xlu0 %1145  ;;  %v1141_v57 = vrot.slane %v1134_v45, %v1768_v37 }
 0x12e   : > { %v1150_v41 = vsel %vm1149_vm9, %v1146_v62, %v1148_v61  ;;  %v1153_v39 = vsel %vm1149_vm9, %v1148_v61, %v1146_v62  ;;  %v1120_v61 = vmul.f32 %v1492_v21, %v1118_v49  ;;  %v1098_v13 = vadd.f32 %v1097_v54, %v1075_v11 }
 0x12f   : > { %v1157_v50 = vcombine.low %v1150_v41, %v1153_v39  ;;  %v1143_v16 = vmul.f32 %v1493_v33, %v1141_v57 }
 0x130   : > { %v1121_v10 = vadd.f32 %v1120_v61, %v1098_v13 }
 0x131   : > { %v1171_v22 = vpop.permute.xlu1 %1170  ;;  %v1169_v18 = vpop.permute.xlu0 %1168  ;;  %v1164_v62 = vrot.slane %v1157_v50, %v1768_v37 }
 0x132   : > { %v1173_v47 = vsel %vm1172_vm10, %v1169_v18, %v1171_v22  ;;  %v1176_v55 = vsel %vm1172_vm10, %v1171_v22, %v1169_v18  ;;  %v1144_v28 = vadd.f32 %v1143_v16, %v1121_v10 }
 0x133   : > { %v1180_v58 = vcombine.low %v1173_v47, %v1176_v55  ;;  %v1166_v4 = vmul.f32 %v1494_v30, %v1164_v62  ;;  %v1502_v62 = vld [vmem:[%s2158_s0 + $0xc0] sm:$0xf] }
 0x135   : > { %v1194_v32 = vpop.permute.xlu1 %1193  ;;  %v1192_v38 = vpop.permute.xlu0 %1191  ;;  %v1187_v17 = vrot.slane %v1180_v58, %v1768_v37  ;;  %v1167_v29 = vadd.f32 %v1166_v4, %v1144_v28 }
 0x136   : > { %v1196_v52 = vsel %vm1195_vm11, %v1192_v38, %v1194_v32  ;;  %v1199_v8 = vsel %vm1195_vm11, %v1194_v32, %v1192_v38  ;;  %v1498_v32 = vld [vmem:[%s2158_s0 + $0xb0] sm:$0xf] }
 0x137   : > { %v1203_v63 = vcombine.low %v1196_v52, %v1199_v8  ;;  %v1189_v14 = vmul.f32 %v1495_v60, %v1187_v17  ;;  %v1501_v52 = vld [vmem:[%s2158_s0 + $0xbc] sm:$0xf]  ;;  %v1659_v60 = vmov 1966171168  }
 0x138   : > { %v1365_v10 = vunpack.c.l.s4 %v1659_v60 }
 0x139   : > { %v1217_v51 = vpop.permute.xlu1 %1216  ;;  %v1215_v53 = vpop.permute.xlu0 %1214  ;;  %v1210_v5 = vrot.slane %v1203_v63, %v1768_v37  ;;  %v1190_v41 = vadd.f32 %v1189_v14, %v1167_v29 }
 0x13a   : > { %v1219_v34 = vsel %vm1218_vm12, %v1215_v53, %v1217_v51  ;;  %v1222_v59 = vsel %vm1218_vm12, %v1217_v51, %v1215_v53  ;;  %v1366_v4 = vunpack.c.0.s8 %v1365_v10 }
 0x13b   : > { %v1226_v20 = vcombine.low %v1219_v34, %v1222_v59  ;;  %v1212_v26 = vmul.f32 %v1496_v23, %v1210_v5 }
 0x13c   : > { %v1369_v5 = vsub.s32 %v1366_v4, %v1696_v1 }
 0x13d   : > { %v1240_v2 = vpop.permute.xlu1 %1239  ;;  %v1238_v48 = vpop.permute.xlu0 %1237  ;;  %v1233_v15 = vrot.slane %v1226_v20, %v1768_v37  ;;  %v1213_v45 = vadd.f32 %v1212_v26, %v1190_v41 }
 0x13e   : > { %v1242_v3 = vsel %vm1241_vm13, %v1238_v48, %v1240_v2  ;;  %v1245_v12 = vsel %vm1241_vm13, %v1240_v2, %v1238_v48 }
 0x13f   : > { %v1249_v22 = vcombine.low %v1242_v3, %v1245_v12  ;;  %v1235_v39 = vmul.f32 %v1497_v7, %v1233_v15 }
 0x141   : > { %v1263_v18 = vpop.permute.xlu1 %1262  ;;  %v1261_v19 = vpop.permute.xlu0 %1260  ;;  %v1256_v35 = vrot.slane %v1249_v22, %v1768_v37  ;;  %v1236_v51 = vadd.f32 %v1235_v39, %v1213_v45 }
 0x142   : > { %v1265_v24 = vsel %vm1264_vm14, %v1261_v19, %v1263_v18  ;;  %v1268_v25 = vsel %vm1264_vm14, %v1263_v18, %v1261_v19 }
 0x143   : > { %v1272_v6 = vcombine.low %v1265_v24, %v1268_v25  ;;  %v1258_v46 = vmul.f32 %v1498_v32, %v1256_v35 }
 0x145   : > { %v1286_v36 = vpop.permute.xlu1 %1285  ;;  %v1284_v27 = vpop.permute.xlu0 %1283  ;;  %v1279_v42 = vrot.slane %v1272_v6, %v1768_v37  ;;  %v1259_v8 = vadd.f32 %v1258_v46, %v1236_v51 }
 0x146   : > { %v1288_v38 = vsel %vm1287_vm15, %v1284_v27, %v1286_v36  ;;  %v1291_v40 = vsel %vm1287_vm15, %v1286_v36, %v1284_v27 }
 0x147   : > { %v1295_v43 = vcombine.low %v1288_v38, %v1291_v40  ;;  %v1281_v53 = vmul.f32 %v1499_v44, %v1279_v42 }
 0x149   : > { %v1302_v47 = vrot.slane %v1295_v43, %v1768_v37  ;;  %v1309_v55 = vpop.permute.xlu1 %1308  ;;  %v1307_v56 = vpop.permute.xlu0 %1306  ;;  %v1282_v59 = vadd.f32 %v1281_v53, %v1259_v8 }
 0x14a   : > { %v1311_v49 = vsel %vm1310_vm0, %v1307_v56, %v1309_v55  ;;  %v1314_v50 = vsel %vm1310_vm0, %v1309_v55, %v1307_v56 }
 0x14b   : > { %v1318_v21 = vcombine.low %v1311_v49, %v1314_v50  ;;  %v1304_v9 = vmul.f32 %v1500_v31, %v1302_v47 }
 0x14d   : > { %v1325_v54 = vrot.slane %v1318_v21, %v1768_v37  ;;  %v1332_v57 = vpop.permute.xlu1 %1331  ;;  %v1330_v58 = vpop.permute.xlu0 %1329  ;;  %v1305_v63 = vadd.f32 %v1304_v9, %v1282_v59 }
 0x14e   : > { %v1334_v33 = vsel %vm1333_vm1, %v1330_v58, %v1332_v57  ;;  %v1337_v34 = vsel %vm1333_vm1, %v1332_v57, %v1330_v58 }
 0x14f   : > { %v1327_v11 = vmul.f32 %v1501_v52, %v1325_v54  ;;  %v1341_v61 = vcombine.low %v1334_v33, %v1337_v34 }
 0x151   : > { %v1348_v2 = vrot.slane %v1341_v61, %v1768_v37  ;;  %v1328_v48 = vadd.f32 %v1327_v11, %v1305_v63 }
 0x153   : > { %v1350_v30 = vmul.f32 %v1502_v62, %v1348_v2 }
 0x155   : > { %v1351_v3 = vadd.f32 %v1350_v30, %v1328_v48 }
 0x157   : > { %v1503_v12 = vrot.slane %v1351_v3, 9 }
 0x159   : > { %v1356_v13 = vadd.f32 %v1503_v12, %v1351_v3 }
 0x15b   : > { %v1504_v16 = vmul.f32 -1.442695, %v1356_v13 }
 0x15d   : > { %1582 = vpow2.f32 %v1504_v16 }
 0x16a   : > { %v1583_v17 = vpop.eup %1582 }
 0x16b   : > { %v1360_v20 = vadd.f32 1.0, %v1583_v17 }
 0x16d   : > { %1584 = vrcp.f32 %v1360_v20 }
 0x17a   : > { %v1585_v22 = vpop.eup %1584 }
 0x17b   : > { %v1370_v37 = vrot.slane %v1585_v22, %v1369_v5 }
 0x17d   : > { %1376 = vst.msk [vmem:[%s167_s22] sm:$0x3] %vm1374_vm2, %v1370_v37 }
 0x17e PF: > { %s12_s11 = sadd.s32 1, %s1608_s11   ;;  %s2161_s9 = smov %s1604_s10 }
 0x17f   : > { %p9_p5 = scmp.ge.s32.totalorder %s12_s11, 4   ;;  %s2162_s10 = smov %s2164_s12 }
 0x181   :  { %11 = sbr.rel (!%p9_p5) target bundleno = 2 (0x2), region = 114 }

</bundles_post_ra>
